<compile_context>
chip_gen: v5e
topology: v5e:2x2
jax: 0.10.0
libtpu: 0.0.40
codegen_flags: <defaults>
</compile_context>

<pallas_src>
import functools

import jax
import jax.numpy as jnp
from jax.experimental import pallas as pl
from jax.experimental.pallas import tpu as pltpu

LN_EPS = 1e-5  # nn.LayerNorm default


def _round_up(x, m):
    return (x + m - 1) // m * m


def prenorm_linear_kernel(x_ref, w_ref, b_ref, o_ref, xhat_ref, *,
                          d_actual, d_padded):
    # x_ref:    (tm, Dp)  full rows of x (feature dim padded to Dp)
    # w_ref:    (Dp, tn)  folded weight tile  W' = diag(gamma) @ W   (MXU dtype)
    # b_ref:    (1, tn)   folded bias tile    b' = beta @ W + b      (f32)
    # o_ref:    (tm, tn)  output tile
    # xhat_ref: (tm, Dp)  VMEM scratch with the normalized rows      (MXU dtype)

    @pl.when(pl.program_id(1) == 0)
    def _():
        # LayerNorm statistics in f32, computed once per row tile and cached.
        x = x_ref[...].astype(jnp.float32)
        inv_d = 1.0 / d_actual
        mean = jnp.sum(x, axis=-1, keepdims=True) * inv_d
        centered = x - mean
        if d_actual != d_padded:
            # Mask out padded feature columns so they do not bias the variance.
            col = jax.lax.broadcasted_iota(jnp.int32, centered.shape, 1)
            centered = jnp.where(col < d_actual, centered, 0.0)
        var = jnp.sum(centered * centered, axis=-1, keepdims=True) * inv_d
        xhat_ref[...] = (centered * jax.lax.rsqrt(var + LN_EPS)).astype(
            xhat_ref.dtype)

    out = jnp.dot(xhat_ref[...], w_ref[...],
                  preferred_element_type=jnp.float32)
    o_ref[...] = (out + b_ref[...].astype(jnp.float32)).astype(o_ref.dtype)


def prenorm(x, gamma, beta, w, wb, *, tm=256, mxu_dtype=jnp.bfloat16):
    """fn(LayerNorm(x)) with fn = Linear(D, D); weight laid out (D_in, D_out).

    x: (B, N, D); gamma/beta: (D,) LayerNorm affine; w: (D, D); wb: (D,).
    """
    B, N, D = x.shape
    M = B * N

    # ---- fold the LayerNorm affine into the Linear (one-time, outside) ----
    w32 = w.astype(jnp.float32)
    w_folded = gamma.astype(jnp.float32)[:, None] * w32              # (D, D)
    b_folded = beta.astype(jnp.float32) @ w32 + wb.astype(jnp.float32)

    # ---- padding: D -> multiple of 128 (lane dense), M -> multiple of tm ----
    Dp = _round_up(D, 128)
    tm_eff = min(tm, _round_up(M, 8))
    Mp = _round_up(M, tm_eff)

    # Feature-axis tile (divides Dp, <= 512) -> bounded resident weight block.
    k = Dp // 128
    tn = 128
    for c in (4, 3, 2, 1):
        if k % c == 0:
            tn = 128 * c
            break

    x2 = x.reshape(M, D)
    if (Mp, Dp) != (M, D):
        x2 = jnp.pad(x2, ((0, Mp - M), (0, Dp - D)))
    if Dp != D:
        w_folded = jnp.pad(w_folded, ((0, Dp - D), (0, Dp - D)))
        b_folded = jnp.pad(b_folded, (0, Dp - D))
    w_folded = w_folded.astype(mxu_dtype)
    b_folded = b_folded.reshape(1, Dp)

    grid = (Mp // tm_eff, Dp // tn)

    # ---- explicit VMEM budget (double-buffered pipeline tiles + scratch) ----
    isz_x = x.dtype.itemsize
    isz_m = jnp.dtype(mxu_dtype).itemsize
    vmem_bytes = (
        2 * tm_eff * Dp * isz_x        # x tiles (double buffered)
        + 2 * Dp * tn * isz_m          # weight tiles
        + 2 * 8 * tn * 4               # bias tiles (sublane padded)
        + 2 * tm_eff * tn * isz_x      # output tiles
        + tm_eff * Dp * isz_m          # x_hat scratch
        + 4 * tm_eff * Dp * 4          # f32 temporaries for the LN math
    )
    vmem_limit = int(min(64 * 1024 * 1024,
                         max(8 * 1024 * 1024, (vmem_bytes * 3) // 2)))

    kernel = functools.partial(prenorm_linear_kernel,
                               d_actual=D, d_padded=Dp)

    out2 = pl.pallas_call(
        kernel,
        out_shape=jax.ShapeDtypeStruct((Mp, Dp), x.dtype),
        grid_spec=pltpu.PrefetchScalarGridSpec(
            num_scalar_prefetch=0,
            grid=grid,
            in_specs=[
                pl.BlockSpec((tm_eff, Dp), lambda i, j: (i, 0)),  # x rows
                pl.BlockSpec((Dp, tn), lambda i, j: (0, j)),      # W' tile
                pl.BlockSpec((1, tn), lambda i, j: (0, j)),       # b' tile
            ],
            out_specs=pl.BlockSpec((tm_eff, tn), lambda i, j: (i, j)),
            scratch_shapes=[pltpu.VMEM((tm_eff, Dp), mxu_dtype)],
        ),
        compiler_params=pltpu.CompilerParams(
            dimension_semantics=("parallel", "arbitrary"),
            vmem_limit_bytes=vmem_limit,
        ),
    )(x2, w_folded, b_folded)

    return out2[:M, :D].reshape(B, N, D)


def prenorm_ref(x, gamma, beta, w, wb):
    xf = x.astype(jnp.float32)
    mean = jnp.mean(xf, axis=-1, keepdims=True)
    var = jnp.mean((xf - mean) ** 2, axis=-1, keepdims=True)
    y = (xf - mean) / jnp.sqrt(var + LN_EPS) * gamma + beta
    return (y @ w + wb).astype(x.dtype)


if __name__ == "__main__":
    key = jax.random.PRNGKey(0)
    kx, kg, kb, kw, kwb, kx2 = jax.random.split(key, 6)

    # ---- case 1: lane-dense D (multiple of 128), bf16 MXU operands --------
    B, N, D = 2, 136, 128
    x = jax.random.normal(kx, (B, N, D), dtype=jnp.float32)
    gamma = 1.0 + 0.1 * jax.random.normal(kg, (D,), dtype=jnp.float32)
    beta = 0.05 * jax.random.normal(kb, (D,), dtype=jnp.float32)
    w = 0.02 * jax.random.normal(kw, (D, D), dtype=jnp.float32)
    wb = 0.02 * jax.random.normal(kwb, (D,), dtype=jnp.float32)

    out = jax.block_until_ready(prenorm(x, gamma, beta, w, wb))
    ref = prenorm_ref(x, gamma, beta, w, wb)
    assert out.shape == (B, N, D)
    assert jnp.allclose(out, ref, atol=2e-2, rtol=2e-2), "case1 mismatch"

    # ---- case 2: D not a multiple of 128 (padded + masked LN), f32 MXU ----
    B2, N2, D2 = 2, 40, 96
    x_b = jax.random.normal(kx2, (B2, N2, D2), dtype=jnp.float32)
    gamma2 = 1.0 + 0.1 * jax.random.normal(kg, (D2,), dtype=jnp.float32)
    beta2 = 0.05 * jax.random.normal(kb, (D2,), dtype=jnp.float32)
    w2 = 0.02 * jax.random.normal(kw, (D2, D2), dtype=jnp.float32)
    wb2 = 0.02 * jax.random.normal(kwb, (D2,), dtype=jnp.float32)

    out_b = jax.block_until_ready(
        prenorm(x_b, gamma2, beta2, w2, wb2, mxu_dtype=jnp.float32))
    ref_b = prenorm_ref(x_b, gamma2, beta2, w2, wb2)
    assert out_b.shape == (B2, N2, D2)
    assert jnp.allclose(out_b, ref_b, atol=1e-2, rtol=1e-2), "case2 mismatch"

    print("KERNEL_OK")
</pallas_src>

<mosaic_0001>
module attributes {stable_mosaic.version = 11 : i64} {
  func.func @prenorm_linear_kernel(%arg0: i32, %arg1: i32, %arg2: memref<256x128xf32, #tpu.memory_space<vmem>>, %arg3: memref<128x128xbf16, #tpu.memory_space<vmem>>, %arg4: memref<1x128xf32, #tpu.memory_space<vmem>>, %arg5: memref<256x128xf32, #tpu.memory_space<vmem>>, %arg6: memref<256x128xbf16, #tpu.memory_space<vmem>>) attributes {dimension_semantics = [#tpu.dimension_semantics<parallel>, #tpu.dimension_semantics<arbitrary>], iteration_bounds = array<i64: 2, 1>, scalar_prefetch = 0 : i64, scratch_operands = 1 : i64, tpu.core_type = #tpu.core_type<tc>, window_params = [{transform_indices = @transform_0, window_bounds = array<i64: 256, 128>}, {transform_indices = @transform_1, window_bounds = array<i64: 128, 128>}, {transform_indices = @transform_2, window_bounds = array<i64: 1, 128>}, {transform_indices = @transform_3, window_bounds = array<i64: 256, 128>}]} {
    %c0_i32 = arith.constant 0 : i32
    %0 = arith.cmpi eq, %arg1, %c0_i32 : i32
    %1 = arith.extui %0 : i1 to i32
    %c0_i32_0 = arith.constant 0 : i32
    %2 = arith.cmpi ne, %1, %c0_i32_0 : i32
    scf.if %2 {
      %c0_8 = arith.constant 0 : index
      %c0_9 = arith.constant 0 : index
      %10 = vector.load %arg2[%c0_8, %c0_9] : memref<256x128xf32, #tpu.memory_space<vmem>>, vector<256x128xf32>
      %cst_10 = arith.constant dense<0.000000e+00> : vector<256xf32>
      %11 = vector.multi_reduction <add>, %10, %cst_10 [1] : vector<256x128xf32> to vector<256xf32>
      %12 = vector.shape_cast %11 : vector<256xf32> to vector<256x1xf32>
      %cst_11 = arith.constant 7.812500e-03 : f32
      %13 = vector.broadcast %cst_11 : f32 to vector<256x1xf32>
      %14 = arith.mulf %12, %13 : vector<256x1xf32>
      %15 = vector.broadcast %14 : vector<256x1xf32> to vector<256x128xf32>
      %16 = arith.subf %10, %15 : vector<256x128xf32>
      %17 = arith.mulf %16, %16 : vector<256x128xf32>
      %cst_12 = arith.constant dense<0.000000e+00> : vector<256xf32>
      %18 = vector.multi_reduction <add>, %17, %cst_12 [1] : vector<256x128xf32> to vector<256xf32>
      %19 = vector.shape_cast %18 : vector<256xf32> to vector<256x1xf32>
      %cst_13 = arith.constant 7.812500e-03 : f32
      %20 = vector.broadcast %cst_13 : f32 to vector<256x1xf32>
      %21 = arith.mulf %19, %20 : vector<256x1xf32>
      %cst_14 = arith.constant 9.99999974E-6 : f32
      %22 = vector.broadcast %cst_14 : f32 to vector<256x1xf32>
      %23 = arith.addf %21, %22 : vector<256x1xf32>
      %24 = math.rsqrt %23 : vector<256x1xf32>
      %25 = vector.broadcast %24 : vector<256x1xf32> to vector<256x128xf32>
      %26 = arith.mulf %16, %25 : vector<256x128xf32>
      %27 = arith.truncf %26 : vector<256x128xf32> to vector<256x128xbf16>
      %c0_15 = arith.constant 0 : index
      %c0_16 = arith.constant 0 : index
      %28 = vector.load %arg6[%c0_15, %c0_16] : memref<256x128xbf16, #tpu.memory_space<vmem>>, vector<256x128xbf16>
      tpu.vector_store %arg6[%c0_15, %c0_16], %27 {strides = array<i32>} : memref<256x128xbf16, #tpu.memory_space<vmem>>, vector<256x128xbf16>,
    } else {
    }
    %c0 = arith.constant 0 : index
    %c0_1 = arith.constant 0 : index
    %3 = vector.load %arg6[%c0, %c0_1] : memref<256x128xbf16, #tpu.memory_space<vmem>>, vector<256x128xbf16>
    %c0_2 = arith.constant 0 : index
    %c0_3 = arith.constant 0 : index
    %4 = vector.load %arg3[%c0_2, %c0_3] : memref<128x128xbf16, #tpu.memory_space<vmem>>, vector<128x128xbf16>
    %cst = arith.constant dense<0.000000e+00> : vector<256x128xf32>
    %5 = tpu.matmul %3, %4, %cst {dimension_numbers = #tpu.dot_dimension_numbers<[1], [0], [0], [1], [0, 0, 1, 1], [], []>} : vector<256x128xbf16>, vector<128x128xbf16>, vector<256x128xf32> -> vector<256x128xf32>
    %c0_4 = arith.constant 0 : index
    %c0_5 = arith.constant 0 : index
    %6 = vector.load %arg4[%c0_4, %c0_5] : memref<1x128xf32, #tpu.memory_space<vmem>>, vector<1x128xf32>
    %7 = vector.broadcast %6 : vector<1x128xf32> to vector<256x128xf32>
    %8 = arith.addf %5, %7 : vector<256x128xf32>
    %c0_6 = arith.constant 0 : index
    %c0_7 = arith.constant 0 : index
    %9 = vector.load %arg5[%c0_6, %c0_7] : memref<256x128xf32, #tpu.memory_space<vmem>>, vector<256x128xf32>
    tpu.vector_store %arg5[%c0_6, %c0_7], %8 {strides = array<i32>} : memref<256x128xf32, #tpu.memory_space<vmem>>, vector<256x128xf32>,
    return
  }
  func.func @transform_0(%arg0: i32, %arg1: i32) -> (i32, i32) {
    %c0_i32 = arith.constant 0 : i32
    %c0_i32_0 = arith.constant 0 : i32
    return %arg0, %c0_i32 : i32, i32
  }
  func.func @transform_1(%arg0: i32, %arg1: i32) -> (i32, i32) {
    %c0_i32 = arith.constant 0 : i32
    %c0_i32_0 = arith.constant 0 : i32
    return %c0_i32, %arg1 : i32, i32
  }
  func.func @transform_2(%arg0: i32, %arg1: i32) -> (i32, i32) {
    %c0_i32 = arith.constant 0 : i32
    %c0_i32_0 = arith.constant 0 : i32
    return %c0_i32, %arg1 : i32, i32
  }
  func.func @transform_3(%arg0: i32, %arg1: i32) -> (i32, i32) {
    %c0_i32 = arith.constant 0 : i32
    return %arg0, %arg1 : i32, i32
  }
}

</mosaic_0001>

<bundles_post_ra>
// kernel: tpu_custom_call.1
= control target key start
LH: loop header
LB: loop body
LE: loop exit
PB: predicated region body
PF: predicated region fallthrough
CT: control target
= control target key end

     0   :  { %s3023_s0 = inlined_call_operand.hbm [shape: f32[512,128], index: 0, kind: input, shape index: {}]   ;;  %s3024_s1 = inlined_call_operand.hbm [shape: bf16[128,128], index: 1, kind: input, shape index: {}]   ;;  %s3025_s2 = inlined_call_operand.vmem [shape: f32[1,128], index: 2, kind: input, shape index: {}]   ;;  %s3026_s3 = inlined_call_operand.hbm [shape: f32[512,128], index: 3, kind: output, shape index: {}]  }
   0x1   :  { %3027 = sst [smem:[#allocation12_spill]] %s3024_s1 }
   0x2   :  { %8 = vsyncpa [#allocation4], 0 }
   0x3   :  { %10 = vsyncpa [#allocation4 + $0x1], 0 }
   0x4   :  { %11 = vsyncpa [#allocation7], 0 }
   0x5   :  { %12 = vsyncpa [#allocation5], 0 }
   0x6   :  { %14 = vsyncpa [#allocation5 + $0x1], 0  ;;  %s2004_s12 = smov 0   ;;  %s2006_s13 = smov 0  }
   0x7   :  { %s2008_s14 = smov 0   ;;  %s2010_s15 = smov 0  }
   0x8   :  { %s2012_s16 = smov 0   ;;  %s2014_s17 = smov 0  }
   0x9 LB: > { %s1426_s18 = sadd.s32 4294967295, %s1975_s17   ;;  %s1427_s19 = sadd.s32 4294967294, %s1975_s17   ;;  %s1975_s17 = sphi %s2014_s17, %s20_s17   ;;  %s1971_s16 = sphi %s2012_s16, %s3060_s16   ;;  %s1967_s15 = sphi %s2010_s15, %s3059_s15   ;;  %s1963_s14 = sphi %s2008_s14, %s3058_s14   ;;  %s1959_s13 = sphi %s2006_s13, %s3057_s13   ;;  %s1955_s12 = sphi %s2004_s12, %s3056_s12  }
   0xa   : > { %p52_p0 = scmp.ne.s32.totalorder %s1959_s13, %s1955_s12  ;;  %p2038_p1 = scmp.eq.s32.totalorder %s1426_s18, 0 }
   0xb   : > { %p2042_p2 = scmp.eq.s32.totalorder %s1426_s18, 1  ;;  %p136_p3 = scmp.eq.s32.totalorder %s1427_s19, 1 }
   0xc   : > { %p2048_p4 = por %p2038_p1, %p52_p0  ;;  %p1428_p5 = scmp.ge.s32.totalorder %s1975_s17, 1 }
   0xd   : > { %p2053_p6 = por %p136_p3, %p52_p0  ;;  %p143_p7 = scmp.lt.s32.totalorder %s1975_s17, 3 }
   0xe   : > { %s3032_s1 = sld [smem:[#allocation12_spill]]  ;;  %s1977_s28 = smov [#allocation6]  }
   0xf   : > { %p2061_p8 = pnand %p1428_p5, %p143_p7  ;;  %s158_s29 = sshll.u32 %s1977_s28, 4  ;;  %s159_s29 = int_to_ptr.vmem [resolvable:$true] %s158_s29 }
  0x10   : > { %p1431_p11 = scmp.ge.s32.totalorder %s1975_s17, 2  ;;  %s1978_s30 = smov 64  }
  0x11   : > { %p1693_p9 = pneg %p2061_p8  ;;  %s1979_s4 = smov 4  }
  0x12   : > { %s32_s5 = sadd.s32 1, %s1971_s16  ;;  %s39_s6 = sadd.s32 1, %s1963_s14 }
  0x13   : > { %p1694_p10 = pnand %p1693_p9, %p2038_p1  ;;  %p34_p12 = scmp.ge.s32.totalorder %s32_s5, 2 }
  0x14   : > { %s156_s26 = sshll.u32 %s3032_s1, 4  ;;  %p46_p13 = scmp.ne.s32.totalorder %s1963_s14, %s1959_s13  ;;  %s157_s26 = int_to_ptr.hbm [resolvable:$true] %s156_s26 }
  0x15   : > { %1696 = dma.hbm_to_vmem [thread:$0]  (!%p1694_p10), %s157_s26, 1024, %s159_s29, [#allocation7], %s1978_s30, %s1978_s30, %s1979_s4  }
  0x16   : > { %p47_p0 = scmp.eq.s32.totalorder %s1975_s17, 0  ;;  %s3062_s5 = smov (%p34_p12, %s32_s5), 0 }
  0x17   : > { %p2083_p5 = por %p2042_p2, %p46_p13  ;;  %s36_s9 = ssub.s32 %s1971_s16, %s3062_s5 }
  0x18   : > { %p2077_p3 = por %p47_p0, %p46_p13  ;;  %p1706_p7 = scmp.lt.s32.totalorder %s1975_s17, 2 }
  0x19   : > { %p37_p9 = scmp.eq.s32.totalorder %s36_s9, 0  ;;  %s178_s10 = sand.u32 1, %s1963_s14  }
  0x1a   : > { %s1432_s11 = sshll.u32 %s178_s10, 8  ;;  %s1540_s19 = sshll.u32 %s1971_s16, 8 }
  0x1b   : > { %s2092_s18 = scalar_select %p37_p9, %s1963_s14, %s39_s6  }
  0x1c   : > { %s187_s26 = scalar_lea.hbm %s3023_s0, %s1540_s19  ;;  %s182_s28 = scalar_lea.vmem [#allocation3], %s1432_s11 }
  0x1d   : > { %s190_s29 = sshll.u32 %s182_s28, 4  ;;  %s188_s21 = sshll.u32 %s187_s26, 4  ;;  %s191_s29 = int_to_ptr.vmem [resolvable:$true] %s190_s29  ;;  %s189_s21 = int_to_ptr.hbm [resolvable:$true] %s188_s21 }
  0x1e   : > { %p1698_p2 = pnand %p1706_p7, %p2077_p3  ;;  %s179_s30 = scalar_lea.sflag [#allocation4], %s178_s10 }
  0x1f   : > { %s1980_s4 = smov 128   ;;  %s1981_s1 = smov 8  }
  0x20   : > { %1700 = dma.hbm_to_vmem [thread:$0]  (!%p1698_p2), %s189_s21, 4096, %s191_s29, %s179_s30, %s1980_s4, %s1980_s4, %s1981_s1  }
  0x21   : > { %202 = sbr.rel (%p2061_p8) target bundleno = 551 (0x227), region = 32  ;;  %s2103_s6 = sand.u32 (!%p2061_p8), 1, %s1959_s13  }
  0x22   : > { %s1436_s9 = sshll.u32 (!%p2061_p8), %s2103_s6, 8  ;;  %s205_s11 = scalar_lea.sflag (!%p2061_p8), [#allocation4], %s2103_s6 }
  0x23   : > { %s2109_s19 = scalar_lea.vmem (!%p2061_p8), [#allocation3], %s1436_s9 }
  0x26   : > { %1942 = dma.done.wait (%p2048_p4), %s205_s11, 4096  }
  0x27   : > { %1944 = vsyncadd (%p2048_p4), %s205_s11, 4294963200 }
  0x28   : > { %1946 = dma.done.wait (%p2038_p1), [#allocation7], 1024  }
  0x29   : > { %1948 = vsyncadd (%p2038_p1), [#allocation7], 4294966272  ;;  %v2120_v0 = vld [vmem:[%s2109_s19 + $0xc0] sm:$0xff]  ;;  %v2132_v3 = vld [vmem:[%s2109_s19 + $0xc8] sm:$0xff]  ;;  %s2920_s22 = scalar_lea.vmem [#allocation8], %s1436_s9  ;;  %s1565_s27 = sshll.u32 %s1967_s15, 8 }
  0x2a   : > { %v2123_v1 = vld [vmem:[%s2109_s19 + $0x80] sm:$0xff]  ;;  %329 = vadd.xlane.f32.xlu1 %v2120_v0  ;;  %v2135_v4 = vld [vmem:[%s2109_s19 + $0x88] sm:$0xff]  ;;  %v2150_v8 = vld [vmem:[%s2109_s19 + $0x90] sm:$0xff]  ;;  %s1315_s24 = scalar_lea.hbm %s3026_s3, %s1565_s27  ;;  %s1316_s25 = sshll.u32 %s2920_s22, 4  ;;  %s1317_s25 = int_to_ptr.vmem [resolvable:$true] %s1316_s25 }
  0x2b   : > { %v2126_v2 = vld [vmem:[%s2109_s19] sm:$0xff]  ;;  %313 = vadd.xlane.f32.xlu0 %v2123_v1  ;;  %v2138_v5 = vld [vmem:[%s2109_s19 + $0x8] sm:$0xff]  ;;  %v2156_v9 = vld [vmem:[%s2109_s19 + $0xd0] sm:$0xff]  ;;  %s1318_s26 = sshll.u32 %s1315_s24, 4  ;;  %s1303_s15 = scalar_lea.sflag [#allocation5], %s2103_s6  ;;  %s1319_s26 = int_to_ptr.hbm [resolvable:$true] %s1318_s26 }
  0x2c   : > { %281 = vadd.xlane.f32.xlu2 %v2126_v2  ;;  %v2144_v6 = vld [vmem:[%s2109_s19 + $0x48] sm:$0xff]  ;;  %v2147_v7 = vld [vmem:[%s2109_s19 + $0x40] sm:$0xff]  ;;  %v2159_v10 = vld [vmem:[%s2109_s19 + $0x98] sm:$0xff]  ;;  %s1903_s28 = sshra.s32 %s1319_s26, 4  ;;  %s1909_s4 = scalar_lea.hbm %s3026_s3, 512  ;;  %s1904_s28 = int_to_ptr.hbm [resolvable:$true] %s1903_s28 }
  0x2d   : > { %v2162_v11 = vld [vmem:[%s2109_s19 + $0xd8] sm:$0xff]  ;;  %v2171_v13 = vld [vmem:[%s2109_s19 + $0x10] sm:$0xff]  ;;  %v2180_v15 = vld [vmem:[%s2109_s19 + $0xa0] sm:$0xff]  ;;  %s1905_s29 = scalar_lea.hbm %s1904_s28, 256  ;;  %p1910_p10 = scmp.lt.s32.totalorder %s1904_s28, %s3026_s3 }
  0x2e   : > { %v2168_v12 = vld [vmem:[%s2109_s19 + $0x18] sm:$0xff]  ;;  %v2174_v14 = vld [vmem:[%s2109_s19 + $0x50] sm:$0xff]  ;;  %v2186_v17 = vld [vmem:[%s2109_s19 + $0xa8] sm:$0xff]  ;;  %p1906_p1 = scmp.ne.s32.totalorder %s1904_s28, %s1905_s29  ;;  %p1911_p12 = scmp.lt.s32.totalorder %s1909_s4, %s1905_s29 }
  0x2f   : > { %v2183_v16 = vld [vmem:[%s2109_s19 + $0x58] sm:$0xff]  ;;  %v2192_v18 = vld [vmem:[%s2109_s19 + $0xe8] sm:$0xff]  ;;  %v2195_v19 = vld [vmem:[%s2109_s19 + $0xe0] sm:$0xff] }
  0x30   : > { %v2198_v20 = vld [vmem:[%s2109_s19 + $0x20] sm:$0xff]  ;;  %v2207_v22 = vld [vmem:[%s2109_s19 + $0x28] sm:$0xff]  ;;  %v2216_v24 = vld [vmem:[%s2109_s19 + $0xb0] sm:$0xff]  ;;  %p1907_p4 = pnand %p1906_p1, %p2083_p5  ;;  %p1912_p13 = por %p1911_p12, %p1910_p10 }
  0x31   : > { %v2204_v21 = vld [vmem:[%s2109_s19 + $0x60] sm:$0xff]  ;;  %v2210_v23 = vld [vmem:[%s2109_s19 + $0x68] sm:$0xff]  ;;  %v2219_v25 = vld [vmem:[%s2109_s19 + $0xf0] sm:$0xff] }
  0x32   : > { %331 = vadd.xlane.f32.xlu1 %v2132_v3  ;;  %v2222_v26 = vld [vmem:[%s2109_s19 + $0xb8] sm:$0xff]  ;;  %v2231_v28 = vld [vmem:[%s2109_s19 + $0x30] sm:$0xff]  ;;  %p1908_p8 = pneg %p1907_p4 }
  0x33   : > { %315 = vadd.xlane.f32.xlu0 %v2135_v4  ;;  %v2228_v27 = vld [vmem:[%s2109_s19 + $0xf8] sm:$0xff]  ;;  %v2234_v29 = vld [vmem:[%s2109_s19 + $0x70] sm:$0xff] }
  0x34   : > { %283 = vadd.xlane.f32.xlu2 %v2138_v5  ;;  %v2240_v30 = vld [vmem:[%s2109_s19 + $0x38] sm:$0xff]  ;;  %p1913_p0 = pnand %p1912_p13, %p1908_p8 }
  0x35   : > { %v2243_v31 = vld [vmem:[%s2109_s19 + $0x78] sm:$0xff] }
  0x3a   : > { %299 = vadd.xlane.f32.xlu1 %v2144_v6 }
  0x3b   : > { %297 = vadd.xlane.f32.xlu0 %v2147_v7 }
  0x3c   : > { %317 = vadd.xlane.f32.xlu2 %v2150_v8 }
  0x42   : > { %333 = vadd.xlane.f32.xlu1 %v2156_v9 }
  0x43   : > { %319 = vadd.xlane.f32.xlu0 %v2159_v10 }
  0x44   : > { %335 = vadd.xlane.f32.xlu2 %v2162_v11 }
  0x4a   : > { %287 = vadd.xlane.f32.xlu1 %v2168_v12 }
  0x4b   : > { %285 = vadd.xlane.f32.xlu0 %v2171_v13 }
  0x4c   : > { %301 = vadd.xlane.f32.xlu2 %v2174_v14 }
  0x52   : > { %321 = vadd.xlane.f32.xlu1 %v2180_v15 }
  0x53   : > { %303 = vadd.xlane.f32.xlu0 %v2183_v16 }
  0x54   : > { %323 = vadd.xlane.f32.xlu2 %v2186_v17 }
  0x5a   : > { %339 = vadd.xlane.f32.xlu1 %v2192_v18 }
  0x5b   : > { %337 = vadd.xlane.f32.xlu0 %v2195_v19 }
  0x5c   : > { %289 = vadd.xlane.f32.xlu2 %v2198_v20 }
  0x62   : > { %305 = vadd.xlane.f32.xlu1 %v2204_v21 }
  0x63   : > { %291 = vadd.xlane.f32.xlu0 %v2207_v22 }
  0x64   : > { %307 = vadd.xlane.f32.xlu2 %v2210_v23 }
  0x6a   : > { %325 = vadd.xlane.f32.xlu1 %v2216_v24 }
  0x6b   : > { %341 = vadd.xlane.f32.xlu0 %v2219_v25 }
  0x6c   : > { %327 = vadd.xlane.f32.xlu2 %v2222_v26 }
  0x72   : > { %343 = vadd.xlane.f32.xlu1 %v2228_v27 }
  0x73   : > { %293 = vadd.xlane.f32.xlu0 %v2231_v28 }
  0x74   : > { %309 = vadd.xlane.f32.xlu2 %v2234_v29 }
  0x7a   : > { %295 = vadd.xlane.f32.xlu1 %v2240_v30 }
  0x7b   : > { %311 = vadd.xlane.f32.xlu0 %v2243_v31 }
  0x9d   : > { %v330_v32 = vpop.xlane.xlu1 %329 }
  0x9e   : > { %v314_v33 = vpop.xlane.xlu0 %313  ;;  %v369_v34 = vmul.f32 0.0078125, %v330_v32 }
  0x9f   : > { %v361_v35 = vmul.f32 0.0078125, %v314_v33  ;;  %v282_v36 = vpop.xlane.xlu2 %281 }
  0xa0   : > { %v2248_v37 = vsub.f32 %v2120_v0, %v369_v34  ;;  %v345_v41 = vmul.f32 0.0078125, %v282_v36 }
  0xa1   : > { %v2251_v38 = vsub.f32 %v2123_v1, %v361_v35 }
  0xa2   : > { %v433_v40 = vmul.f32 %v2248_v37, %v2248_v37  ;;  %v2258_v47 = vsub.f32 %v2126_v2, %v345_v41 }
  0xa3   : > { %v425_v39 = vmul.f32 %v2251_v38, %v2251_v38 }
  0xa4   : > { %489 = vadd.xlane.f32.xlu2 %v433_v40  ;;  %v409_v53 = vmul.f32 %v2258_v47, %v2258_v47 }
  0xa5   : > { %473 = vadd.xlane.f32.xlu0 %v425_v39  ;;  %v332_v42 = vpop.xlane.xlu1 %331 }
  0xa6   : > { %v316_v43 = vpop.xlane.xlu0 %315  ;;  %v370_v44 = vmul.f32 0.0078125, %v332_v42 }
  0xa7   : > { %v362_v45 = vmul.f32 0.0078125, %v316_v43  ;;  %v284_v46 = vpop.xlane.xlu2 %283 }
  0xa8   : > { %v2261_v48 = vsub.f32 %v2132_v3, %v370_v44  ;;  %v346_v50 = vmul.f32 0.0078125, %v284_v46 }
  0xa9   : > { %v2264_v49 = vsub.f32 %v2135_v4, %v362_v45 }
  0xaa   : > { %v434_v52 = vmul.f32 %v2261_v48, %v2261_v48  ;;  %v2273_v56 = vsub.f32 %v2138_v5, %v346_v50 }
  0xab   : > { %v426_v51 = vmul.f32 %v2264_v49, %v2264_v49 }
  0xac   : > { %441 = vadd.xlane.f32.xlu2 %v409_v53  ;;  %v410_v1 = vmul.f32 %v2273_v56, %v2273_v56 }
  0xad   : > { %475 = vadd.xlane.f32.xlu1 %v426_v51  ;;  %491 = vadd.xlane.f32.xlu0 %v434_v52  ;;  %v300_v54 = vpop.xlane.xlu1 %299 }
  0xae   : > { %v298_v55 = vpop.xlane.xlu0 %297  ;;  %v354_v57 = vmul.f32 0.0078125, %v300_v54 }
  0xaf   : > { %v353_v58 = vmul.f32 0.0078125, %v298_v55  ;;  %v318_v59 = vpop.xlane.xlu2 %317 }
  0xb0   : > { %v2276_v60 = vsub.f32 %v2144_v6, %v354_v57  ;;  %v363_v62 = vmul.f32 0.0078125, %v318_v59 }
  0xb1   : > { %v2279_v61 = vsub.f32 %v2147_v7, %v353_v58 }
  0xb2   : > { %v418_v0 = vmul.f32 %v2276_v60, %v2276_v60  ;;  %v2288_v4 = vsub.f32 %v2150_v8, %v363_v62 }
  0xb3   : > { %v417_v63 = vmul.f32 %v2279_v61, %v2279_v61 }
  0xb4   : > { %459 = vadd.xlane.f32.xlu2 %v418_v0  ;;  %v427_v8 = vmul.f32 %v2288_v4, %v2288_v4 }
  0xb5   : > { %457 = vadd.xlane.f32.xlu1 %v417_v63  ;;  %443 = vadd.xlane.f32.xlu0 %v410_v1  ;;  %v334_v2 = vpop.xlane.xlu1 %333 }
  0xb6   : > { %v320_v3 = vpop.xlane.xlu0 %319  ;;  %v371_v5 = vmul.f32 0.0078125, %v334_v2 }
  0xb7   : > { %v364_v6 = vmul.f32 0.0078125, %v320_v3  ;;  %v336_v7 = vpop.xlane.xlu2 %335 }
  0xb8   : > { %v2291_v32 = vsub.f32 %v2156_v9, %v371_v5  ;;  %v372_v34 = vmul.f32 0.0078125, %v336_v7 }
  0xb9   : > { %v2294_v33 = vsub.f32 %v2159_v10, %v364_v6 }
  0xba   : > { %v435_v36 = vmul.f32 %v2291_v32, %v2291_v32  ;;  %v2303_v9 = vsub.f32 %v2162_v11, %v372_v34 }
  0xbb   : > { %v428_v35 = vmul.f32 %v2294_v33, %v2294_v33 }
  0xbc   : > { %v436_v11 = vmul.f32 %v2303_v9, %v2303_v9 }
  0xbd   : > { %493 = vadd.xlane.f32.xlu0 %v435_v36  ;;  %477 = vadd.xlane.f32.xlu1 %v427_v8  ;;  %v288_v39 = vpop.xlane.xlu1 %287 }
  0xbe   : > { %479 = vadd.xlane.f32.xlu2 %v428_v35  ;;  %v286_v40 = vpop.xlane.xlu0 %285  ;;  %v348_v10 = vmul.f32 0.0078125, %v288_v39 }
  0xbf   : > { %v347_v41 = vmul.f32 0.0078125, %v286_v40  ;;  %v302_v42 = vpop.xlane.xlu2 %301 }
  0xc0   : > { %v2306_v43 = vsub.f32 %v2168_v12, %v348_v10  ;;  %v355_v45 = vmul.f32 0.0078125, %v302_v42 }
  0xc1   : > { %v2309_v44 = vsub.f32 %v2171_v13, %v347_v41 }
  0xc2   : > { %v412_v50 = vmul.f32 %v2306_v43, %v2306_v43  ;;  %v2318_v12 = vsub.f32 %v2174_v14, %v355_v45 }
  0xc3   : > { %v411_v46 = vmul.f32 %v2309_v44, %v2309_v44 }
  0xc4   : > { %v419_v14 = vmul.f32 %v2318_v12, %v2318_v12 }
  0xc5   : > { %447 = vadd.xlane.f32.xlu0 %v412_v50  ;;  %495 = vadd.xlane.f32.xlu1 %v436_v11  ;;  %v322_v51 = vpop.xlane.xlu1 %321 }
  0xc6   : > { %445 = vadd.xlane.f32.xlu2 %v411_v46  ;;  %v304_v52 = vpop.xlane.xlu0 %303  ;;  %v365_v13 = vmul.f32 0.0078125, %v322_v51 }
  0xc7   : > { %v356_v53 = vmul.f32 0.0078125, %v304_v52  ;;  %v324_v54 = vpop.xlane.xlu2 %323 }
  0xc8   : > { %v2321_v55 = vsub.f32 %v2180_v15, %v365_v13  ;;  %v366_v58 = vmul.f32 0.0078125, %v324_v54 }
  0xc9   : > { %v2324_v57 = vsub.f32 %v2183_v16, %v356_v53 }
  0xca   : > { %v429_v62 = vmul.f32 %v2321_v55, %v2321_v55  ;;  %v2333_v15 = vsub.f32 %v2186_v17, %v366_v58 }
  0xcb   : > { %v420_v59 = vmul.f32 %v2324_v57, %v2324_v57 }
  0xcc   : > { %v430_v17 = vmul.f32 %v2333_v15, %v2333_v15 }
  0xcd   : > { %481 = vadd.xlane.f32.xlu0 %v429_v62  ;;  %461 = vadd.xlane.f32.xlu1 %v419_v14  ;;  %v340_v63 = vpop.xlane.xlu1 %339 }
  0xce   : > { %463 = vadd.xlane.f32.xlu2 %v420_v59  ;;  %v338_v0 = vpop.xlane.xlu0 %337  ;;  %v374_v16 = vmul.f32 0.0078125, %v340_v63 }
  0xcf   : > { %v373_v1 = vmul.f32 0.0078125, %v338_v0  ;;  %v290_v2 = vpop.xlane.xlu2 %289 }
  0xd0   : > { %v2336_v3 = vsub.f32 %v2192_v18, %v374_v16  ;;  %v349_v6 = vmul.f32 0.0078125, %v290_v2 }
  0xd1   : > { %v2339_v5 = vsub.f32 %v2195_v19, %v373_v1 }
  0xd2   : > { %v438_v34 = vmul.f32 %v2336_v3, %v2336_v3  ;;  %v2348_v18 = vsub.f32 %v2198_v20, %v349_v6 }
  0xd3   : > { %v437_v7 = vmul.f32 %v2339_v5, %v2339_v5 }
  0xd4   : > { %v413_v20 = vmul.f32 %v2348_v18, %v2348_v18 }
  0xd5   : > { %499 = vadd.xlane.f32.xlu0 %v438_v34  ;;  %483 = vadd.xlane.f32.xlu1 %v430_v17  ;;  %v306_v35 = vpop.xlane.xlu1 %305 }
  0xd6   : > { %497 = vadd.xlane.f32.xlu2 %v437_v7  ;;  %v292_v36 = vpop.xlane.xlu0 %291  ;;  %v357_v19 = vmul.f32 0.0078125, %v306_v35 }
  0xd7   : > { %v350_v8 = vmul.f32 0.0078125, %v292_v36  ;;  %v308_v39 = vpop.xlane.xlu2 %307 }
  0xd8   : > { %v2351_v40 = vsub.f32 %v2204_v21, %v357_v19  ;;  %v358_v41 = vmul.f32 0.0078125, %v308_v39 }
  0xd9   : > { %v2354_v10 = vsub.f32 %v2207_v22, %v350_v8 }
  0xda   : > { %v421_v45 = vmul.f32 %v2351_v40, %v2351_v40  ;;  %v2363_v21 = vsub.f32 %v2210_v23, %v358_v41  ;;  %v1561_v41 = vld [vmem:[#allocation6 + $0x20] sm:$0xff] }
  0xdb   : > { %v414_v42 = vmul.f32 %v2354_v10, %v2354_v10 }
  0xdc   : > { %v422_v58 = vmul.f32 %v2363_v21, %v2363_v21 }
  0xdd   : > { %465 = vadd.xlane.f32.xlu0 %v421_v45  ;;  %449 = vadd.xlane.f32.xlu1 %v413_v20  ;;  %v326_v46 = vpop.xlane.xlu1 %325 }
  0xde   : > { %451 = vadd.xlane.f32.xlu2 %v414_v42  ;;  %v342_v50 = vpop.xlane.xlu0 %341  ;;  %v367_v22 = vmul.f32 0.0078125, %v326_v46 }
  0xdf   : > { %v328_v11 = vpop.xlane.xlu2 %327  ;;  %v375_v53 = vmul.f32 0.0078125, %v342_v50  ;;  %v1560_v50 = vld [vmem:[#allocation6 + $0x18] sm:$0xff] }
  0xe0   : > { %v368_v51 = vmul.f32 0.0078125, %v328_v11  ;;  %v2366_v52 = vsub.f32 %v2216_v24, %v367_v22 }
  0xe1   : > { %v2378_v24 = vsub.f32 %v2219_v25, %v375_v53 }
  0xe2   : > { %v2369_v13 = vsub.f32 %v2222_v26, %v368_v51  ;;  %v431_v54 = vmul.f32 %v2366_v52, %v2366_v52 }
  0xe3   : > { %v439_v6 = vmul.f32 %v2378_v24, %v2378_v24 }
  0xe4   : > { %v432_v23 = vmul.f32 %v2369_v13, %v2369_v13 }
  0xe5   : > { %467 = vadd.xlane.f32.xlu1 %v422_v58  ;;  %v344_v59 = vpop.xlane.xlu1 %343 }
  0xe6   : > { %485 = vadd.xlane.f32.xlu2 %v431_v54  ;;  %487 = vadd.xlane.f32.xlu0 %v432_v23  ;;  %v294_v62 = vpop.xlane.xlu0 %293  ;;  %v376_v26 = vmul.f32 0.0078125, %v344_v59  ;;  %v1559_v59 = vld [vmem:[#allocation6 + $0x10] sm:$0xff] }
  0xe7   : > { %v351_v14 = vmul.f32 0.0078125, %v294_v62  ;;  %v310_v63 = vpop.xlane.xlu2 %309 }
  0xe8   : > { %v2381_v0 = vsub.f32 %v2228_v27, %v376_v26  ;;  %v359_v1 = vmul.f32 0.0078125, %v310_v63 }
  0xe9   : > { %v2384_v16 = vsub.f32 %v2231_v28, %v351_v14 }
  0xea   : > { %v440_v2 = vmul.f32 %v2381_v0, %v2381_v0  ;;  %v2393_v27 = vsub.f32 %v2234_v29, %v359_v1  ;;  %v1564_v29 = vld [vmem:[#allocation6 + $0x38] sm:$0xff] }
  0xeb   : > { %v415_v25 = vmul.f32 %v2384_v16, %v2384_v16  ;;  %1662 = vmatpush.bf16.msra.mxu2 %v1564_v29  ;;  %1663 = vmatpush.bf16.msra.mxu3 %v1564_v29 }
  0xec   : > { %v423_v19 = vmul.f32 %v2393_v27, %v2393_v27  ;;  %1181 = vmatpush.bf16.msra.mxu0 %v1564_v29  ;;  %1661 = vmatpush.bf16.msra.mxu1 %v1564_v29 }
  0xed   : > { %501 = vadd.xlane.f32.xlu1 %v439_v6  ;;  %v296_v7 = vpop.xlane.xlu1 %295 }
  0xee   : > { %503 = vadd.xlane.f32.xlu2 %v440_v2  ;;  %453 = vadd.xlane.f32.xlu0 %v415_v25  ;;  %v312_v34 = vpop.xlane.xlu0 %311  ;;  %v352_v28 = vmul.f32 0.0078125, %v296_v7  ;;  %v1558_v7 = vld [vmem:[#allocation6 + $0x8] sm:$0xff] }
  0xef   : > { %v360_v17 = vmul.f32 0.0078125, %v312_v34 }
  0xf0   : > { %v2396_v35 = vsub.f32 %v2240_v30, %v352_v28  ;;  %v1563_v30 = vld [vmem:[#allocation6 + $0x30] sm:$0xff] }
  0xf1   : > { %v2399_v36 = vsub.f32 %v2243_v31, %v360_v17  ;;  %1665 = vmatpush.bf16.msra.mxu2 %v1563_v30  ;;  %1666 = vmatpush.bf16.msra.mxu3 %v1563_v30  ;;  %v1562_v31 = vld [vmem:[#allocation6 + $0x28] sm:$0xff] }
  0xf2   : > { %v416_v8 = vmul.f32 %v2396_v35, %v2396_v35  ;;  %1182 = vmatpush.bf16.msra.mxu0 %v1563_v30  ;;  %1664 = vmatpush.bf16.msra.mxu1 %v1563_v30 }
  0xf3   : > { %v424_v39 = vmul.f32 %v2399_v36, %v2399_v36 }
  0xf5   : > { %455 = vadd.xlane.f32.xlu1 %v416_v8  ;;  %1668 = vmatpush.bf16.msra.mxu2 %v1562_v31 }
  0xf6   : > { %471 = vadd.xlane.f32.xlu0 %v424_v39  ;;  %469 = vadd.xlane.f32.xlu2 %v423_v19 }
  0xf7   : > { %1669 = vmatpush.bf16.msra.mxu3 %v1562_v31  ;;  %1183 = vmatpush.bf16.msra.mxu0 %v1562_v31 }
  0xf8   : > { %1667 = vmatpush.bf16.msra.mxu1 %v1562_v31 }
  0xf9   : > { %1671 = vmatpush.bf16.msra.mxu2 %v1561_v41 }
  0xfb   : > { %1672 = vmatpush.bf16.msra.mxu3 %v1561_v41  ;;  %1184 = vmatpush.bf16.msra.mxu0 %v1561_v41 }
  0xfc   : > { %1670 = vmatpush.bf16.msra.mxu1 %v1561_v41  ;;  %v1557_v41 = vld [vmem:[#allocation6] sm:$0xff] }
  0xfd   : > { %1674 = vmatpush.bf16.msra.mxu2 %v1560_v50 }
  0xff   : > { %1675 = vmatpush.bf16.msra.mxu3 %v1560_v50  ;;  %1185 = vmatpush.bf16.msra.mxu0 %v1560_v50 }
 0x100   : > { %1673 = vmatpush.bf16.msra.mxu1 %v1560_v50 }
 0x101   : > { %1677 = vmatpush.bf16.msra.mxu2 %v1559_v59 }
 0x103   : > { %1678 = vmatpush.bf16.msra.mxu3 %v1559_v59  ;;  %1186 = vmatpush.bf16.msra.mxu0 %v1559_v59 }
 0x104   : > { %1676 = vmatpush.bf16.msra.mxu1 %v1559_v59 }
 0x105   : > { %1680 = vmatpush.bf16.msra.mxu2 %v1558_v7 }
 0x107   : > { %1681 = vmatpush.bf16.msra.mxu3 %v1558_v7  ;;  %1187 = vmatpush.bf16.msra.mxu0 %v1558_v7 }
 0x108   : > { %1679 = vmatpush.bf16.msra.mxu1 %v1558_v7 }
 0x109   : > { %1683 = vmatpush.bf16.msra.mxu2 %v1557_v41 }
 0x10b   : > { %1684 = vmatpush.bf16.msra.mxu3 %v1557_v41  ;;  %1188 = vmatpush.bf16.msra.mxu0 %v1557_v41 }
 0x10c   : > { %1682 = vmatpush.bf16.msra.mxu1 %v1557_v41 }
 0x117   : > { %v490_v45 = vpop.xlane.xlu2 %489 }
 0x118   : > { %v474_v42 = vpop.xlane.xlu0 %473  ;;  %v529_v46 = vmul.f32 0.0078125, %v490_v45 }
 0x119   : > { %v521_v20 = vmul.f32 0.0078125, %v474_v42 }
 0x11a   : > { %v2409_v11 = vadd.f32 1e-05, %v529_v46 }
 0x11b   : > { %v2407_v22 = vadd.f32 1e-05, %v521_v20 }
 0x11c   : > { %vm815_vm3 = vweird.f32 %v2409_v11 }
 0x11d   : > { %1765 = vrsqrt.f32 %v2407_v22  ;;  %vm735_vm1 = vweird.f32 %v2407_v22 }
 0x11e   : > { %1767 = vrsqrt.f32 %v2409_v11 }
 0x11f   : > { %v442_v23 = vpop.xlane.xlu2 %441 }
 0x120   : > { %v476_v51 = vpop.xlane.xlu1 %475  ;;  %v492_v53 = vpop.xlane.xlu0 %491  ;;  %v505_v62 = vmul.f32 0.0078125, %v442_v23 }
 0x121   : > { %v522_v54 = vmul.f32 0.0078125, %v476_v51  ;;  %v530_v58 = vmul.f32 0.0078125, %v492_v53 }
 0x122   : > { %v2423_v6 = vadd.f32 1e-05, %v505_v62 }
 0x123   : > { %v2413_v26 = vpop.eup %1765  ;;  %v2415_v14 = vadd.f32 1e-05, %v522_v54  ;;  %v2417_v63 = vadd.f32 1e-05, %v530_v58 }
 0x124   : > { %v2419_v1 = vpop.eup %1767  ;;  %v730_v2 = vmul.f32 %v2413_v26, %v2407_v22  ;;  %vm736_vm0 = vweird.f32 %v2413_v26  ;;  %vm575_vm14 = vweird.f32 %v2423_v6 }
 0x125   : > { %v810_v25 = vmul.f32 %v2419_v1, %v2409_v11  ;;  %1769 = vrsqrt.f32 %v2415_v14  ;;  %vm816_vm2 = vweird.f32 %v2419_v1  ;;  %vm2453_vm4 = vmor %vm735_vm1, %vm736_vm0  ;;  %vm745_vm5 = vweird.f32 %v2415_v14 }
 0x126   : > { %v731_v34 = vmul.f32 %v2413_v26, %v730_v2  ;;  %1771 = vrsqrt.f32 %v2417_v63  ;;  %vm2464_vm7 = vmor %vm815_vm3, %vm816_vm2  ;;  %vm825_vm9 = vweird.f32 %v2417_v63 }
 0x127   : > { %v811_v28 = vmul.f32 %v2419_v1, %v810_v25  ;;  %1773 = vrsqrt.f32 %v2423_v6  ;;  %v460_v31 = vpop.xlane.xlu2 %459 }
 0x128   : > { %v732_v17 = vmul.f32 0.5, %v731_v34  ;;  %v458_v19 = vpop.xlane.xlu1 %457  ;;  %v444_v8 = vpop.xlane.xlu0 %443  ;;  %v514_v45 = vmul.f32 0.0078125, %v460_v31 }
 0x129   : > { %v812_v39 = vmul.f32 0.5, %v811_v28  ;;  %v513_v29 = vmul.f32 0.0078125, %v458_v19  ;;  %v506_v30 = vmul.f32 0.0078125, %v444_v8 }
 0x12a   : > { %v733_v42 = vsub.f32 1.5, %v732_v17  ;;  %v2441_v59 = vadd.f32 1e-05, %v514_v45 }
 0x12b   : > { %v1770_v20 = vpop.eup %1769  ;;  %v813_v46 = vsub.f32 1.5, %v812_v39  ;;  %v2432_v50 = vadd.f32 1e-05, %v513_v29  ;;  %v2435_v54 = vadd.f32 1e-05, %v506_v30 }
 0x12c   : > { %v1772_v51 = vpop.eup %1771  ;;  %v740_v53 = vmul.f32 %v1770_v20, %v2415_v14  ;;  %v734_v62 = vmul.f32 %v2413_v26, %v733_v42  ;;  %vm746_vm6 = vweird.f32 %v1770_v20 }
 0x12d   : > { %v2437_v58 = vpop.eup %1773  ;;  %v820_v23 = vmul.f32 %v1772_v51, %v2417_v63  ;;  %1775 = vrsqrt.f32 %v2432_v50  ;;  %v814_v7 = vmul.f32 %v2419_v1, %v813_v46  ;;  %vm826_vm8 = vweird.f32 %v1772_v51  ;;  %vm747_vm10 = vmor %vm745_vm5, %vm746_vm6 }
 0x12e   : > { %v741_v2 = vmul.f32 %v1770_v20, %v740_v53  ;;  %v570_v25 = vmul.f32 %v2437_v58, %v2423_v6  ;;  %1777 = vrsqrt.f32 %v2435_v54  ;;  %v738_v11 = vsel %vm2453_vm4, %v2413_v26, %v734_v62  ;;  %vm827_vm12 = vmor %vm825_vm9, %vm826_vm8 }
 0x12f   : > { %v821_v34 = vmul.f32 %v1772_v51, %v820_v23  ;;  %1779 = vrsqrt.f32 %v2441_v59  ;;  %v818_v46 = vsel %vm2464_vm7, %v2419_v1, %v814_v7  ;;  %vm576_vm11 = vweird.f32 %v2437_v58 }
 0x130   : > { %v742_v28 = vmul.f32 0.5, %v741_v2  ;;  %v571_v17 = vmul.f32 %v2437_v58, %v570_v25  ;;  %v494_v19 = vpop.xlane.xlu0 %493  ;;  %v478_v8 = vpop.xlane.xlu1 %477  ;;  %v905_v25 = vmul.f32 %v738_v11, %v2251_v38  ;;  %v913_v7 = vmul.f32 %v818_v46, %v2248_v37  ;;  %vm2509_vm0 = vmor %vm575_vm14, %vm576_vm11 }
 0x131   : > { %v822_v22 = vmul.f32 0.5, %v821_v34  ;;  %v480_v29 = vpop.xlane.xlu2 %479  ;;  %v531_v42 = vmul.f32 0.0078125, %v494_v19  ;;  %v523_v23 = vmul.f32 0.0078125, %v478_v8  ;;  %vm655_vm15 = vweird.f32 %v2432_v50 }
 0x132   : > { %v743_v31 = vsub.f32 1.5, %v742_v28  ;;  %v572_v41 = vmul.f32 0.5, %v571_v17  ;;  %v524_v62 = vmul.f32 0.0078125, %v480_v29  ;;  %vm585_vm4 = vweird.f32 %v2435_v54 }
 0x133   : > { %v2468_v45 = vpop.eup %1775  ;;  %v823_v53 = vsub.f32 1.5, %v822_v22  ;;  %v2485_v19 = vadd.f32 1e-05, %v531_v42  ;;  %v2492_v22 = vadd.f32 1e-05, %v523_v23  ;;  %vm665_vm6 = vweird.f32 %v2441_v59 }
 0x134   : > { %v744_v2 = vmul.f32 %v1770_v20, %v743_v31  ;;  %v650_v26 = vmul.f32 %v2468_v45, %v2432_v50  ;;  %v573_v28 = vsub.f32 1.5, %v572_v41  ;;  %v2481_v1 = vpop.eup %1777  ;;  %vm656_vm13 = vweird.f32 %v2468_v45 }
 0x135   : > { %v824_v34 = vmul.f32 %v1772_v51, %v823_v53  ;;  %v2487_v8 = vpop.eup %1779  ;;  %v580_v39 = vmul.f32 %v2481_v1, %v2435_v54  ;;  %1781 = vrsqrt.f32 %v2485_v19  ;;  %vm586_vm1 = vweird.f32 %v2481_v1  ;;  %vm2521_vm2 = vmor %vm655_vm15, %vm656_vm13 }
 0x136   : > { %v748_v17 = vsel %vm747_vm10, %v1770_v20, %v744_v2  ;;  %v651_v63 = vmul.f32 %v2468_v45, %v650_v26  ;;  %v660_v37 = vmul.f32 %v2487_v8, %v2441_v59  ;;  %v2497_v20 = vadd.f32 1e-05, %v524_v62  ;;  %vm587_vm5 = vmor %vm585_vm4, %vm586_vm1 }
 0x137   : > { %v906_v38 = vmul.f32 %v748_v17, %v2264_v49  ;;  %v828_v14 = vsel %vm827_vm12, %v1772_v51, %v824_v34  ;;  %v574_v42 = vmul.f32 %v2437_v58, %v573_v28  ;;  %v581_v49 = vmul.f32 %v2481_v1, %v580_v39 }
 0x138   : > { %v914_v29 = vmul.f32 %v828_v14, %v2261_v48  ;;  %v652_v11 = vmul.f32 0.5, %v651_v63  ;;  %v448_v30 = vpop.xlane.xlu0 %447  ;;  %v496_v31 = vpop.xlane.xlu1 %495  ;;  %v661_v48 = vmul.f32 %v2487_v8, %v660_v37  ;;  %1783 = vrsqrt.f32 %v2492_v22 }
 0x139   : > { %v1609_v41 = vpack.c.bf16 %v906_v38, %v905_v25  ;;  %v446_v51 = vpop.xlane.xlu2 %445  ;;  %v582_v23 = vmul.f32 0.5, %v581_v49  ;;  %1785 = vrsqrt.f32 %v2497_v20  ;;  %v578_v6 = vsel %vm2509_vm0, %v2437_v58, %v574_v42 }
 0x13a   : > { %v1629_v46 = vpack.c.bf16 %v914_v29, %v913_v7  ;;  %v653_v53 = vsub.f32 1.5, %v652_v11  ;;  %v662_v62 = vmul.f32 0.5, %v661_v48  ;;  %v508_v34 = vmul.f32 0.0078125, %v448_v30 }
 0x13b   : > { %1653 = vst [vmem:[#allocation2 + $0x40] sm:$0xff] %v1609_v41   ;;  %v583_v25 = vsub.f32 1.5, %v582_v23  ;;  %v532_v28 = vmul.f32 0.0078125, %v496_v31  ;;  %vm666_vm3 = vweird.f32 %v2487_v8  ;;  %v507_v63 = vmul.f32 0.0078125, %v446_v51  ;;  %v2533_v14 = vpop.eup %1781 }
 0x13c   : > { %1657 = vst [vmem:[#allocation2 + $0x60] sm:$0xff] %v1629_v46   ;;  %v654_v26 = vmul.f32 %v2468_v45, %v653_v53  ;;  %v663_v17 = vsub.f32 1.5, %v662_v62  ;;  %v2531_v58 = vadd.f32 1e-05, %v508_v34  ;;  %v889_v39 = vmul.f32 %v578_v6, %v2258_v47  ;;  %vm667_vm7 = vmor %vm665_vm6, %vm666_vm3 }
 0x13d   : > { %v584_v38 = vmul.f32 %v2481_v1, %v583_v25  ;;  %v830_v47 = vmul.f32 %v2533_v14, %v2485_v19  ;;  %v2557_v51 = vadd.f32 1e-05, %v507_v63  ;;  %vm835_vm8 = vweird.f32 %v2485_v19 }
 0x13e   : > { %v658_v7 = vsel %vm2521_vm2, %v2468_v45, %v654_v26  ;;  %v664_v29 = vmul.f32 %v2487_v8, %v663_v17  ;;  %v2540_v45 = vadd.f32 1e-05, %v532_v28  ;;  %v2542_v30 = vpop.eup %1783  ;;  %1787 = vrsqrt.f32 %v2531_v58 }
 0x13f   : > { %v897_v54 = vmul.f32 %v658_v7, %v2279_v61  ;;  %v588_v31 = vsel %vm587_vm5, %v2481_v1, %v584_v38  ;;  %v2551_v59 = vpop.eup %1785  ;;  %v750_v61 = vmul.f32 %v2542_v30, %v2492_v22  ;;  %v831_v53 = vmul.f32 %v2533_v14, %v830_v47 }
 0x140   : > { %v482_v11 = vpop.xlane.xlu0 %481  ;;  %v462_v37 = vpop.xlane.xlu1 %461  ;;  %v890_v42 = vmul.f32 %v588_v31, %v2273_v56  ;;  %v668_v49 = vsel %vm667_vm7, %v2487_v8, %v664_v29  ;;  %v760_v48 = vmul.f32 %v2551_v59, %v2497_v20  ;;  %1789 = vrsqrt.f32 %v2540_v45 }
 0x141   : > { %v464_v41 = vpop.xlane.xlu2 %463  ;;  %v898_v46 = vmul.f32 %v668_v49, %v2276_v60  ;;  %v751_v26 = vmul.f32 %v2542_v30, %v750_v61  ;;  %v832_v8 = vmul.f32 0.5, %v831_v53  ;;  %vm755_vm9 = vweird.f32 %v2492_v22 }
 0x142   : > { %v1549_v1 = vld [vmem:[#allocation2 + $0x40] sm:$0xff]  ;;  %v1569_v2 = vpack.c.bf16 %v890_v42, %v889_v39  ;;  %v761_v60 = vmul.f32 %v2551_v59, %v760_v48  ;;  %vm765_vm10 = vweird.f32 %v2497_v20  ;;  %1791 = vrsqrt.f32 %v2557_v51 }
 0x143   : > { %v1553_v23 = vld [vmem:[#allocation2 + $0x60] sm:$0xff]  ;;  %1229 = vmatmul.bf16.vlgmr.msra.gmra.mxu2 %v1549_v1  ;;  %v1589_v56 = vpack.c.bf16 %v898_v46, %v897_v54  ;;  %v752_v62 = vmul.f32 0.5, %v751_v26  ;;  %v525_v6 = vmul.f32 0.0078125, %v482_v11  ;;  %v833_v25 = vsub.f32 1.5, %v832_v8 }
 0x144   : > { %1249 = vmatmul.bf16.vlgmr.msra.gmra.mxu3 %v1553_v23  ;;  %1570 = vst [vmem:[#allocation2 + $0x30] sm:$0xff] %v1569_v2   ;;  %v2570_v50 = vpop.eup %1787  ;;  %v762_v34 = vmul.f32 0.5, %v761_v60  ;;  %v515_v28 = vmul.f32 0.0078125, %v462_v37  ;;  %v516_v7 = vmul.f32 0.0078125, %v464_v41  ;;  %vm756_vm11 = vweird.f32 %v2542_v30 }
 0x145   : > { %1649 = vst [vmem:[#allocation2 + $0x50] sm:$0xff] %v1589_v56   ;;  %v753_v17 = vsub.f32 1.5, %v752_v62  ;;  %v600_v63 = vmul.f32 %v2570_v50, %v2531_v58  ;;  %v2575_v38 = vadd.f32 1e-05, %v525_v6  ;;  %vm836_vm12 = vweird.f32 %v2533_v14  ;;  %vm757_vm15 = vmor %vm755_vm9, %vm756_vm11 }
 0x146   : > { %v763_v29 = vsub.f32 1.5, %v762_v34  ;;  %vm766_vm13 = vweird.f32 %v2551_v59  ;;  %v2579_v11 = vadd.f32 1e-05, %v515_v28  ;;  %v2581_v54 = vpop.eup %1789  ;;  %vm605_vm14 = vweird.f32 %v2531_v58  ;;  %vm2615_vm2 = vmor %vm835_vm8, %vm836_vm12 }
 0x147   : > { %v754_v37 = vmul.f32 %v2542_v30, %v753_v17  ;;  %v601_v31 = vmul.f32 %v2570_v50, %v600_v63  ;;  %1793 = vrsqrt.f32 %v2575_v38  ;;  %v834_v42 = vmul.f32 %v2533_v14, %v833_v25  ;;  %vm767_vm0 = vmor %vm765_vm10, %vm766_vm13 }
 0x148   : > { %v484_v39 = vpop.xlane.xlu1 %483  ;;  %v500_v47 = vpop.xlane.xlu0 %499  ;;  %v764_v49 = vmul.f32 %v2551_v59, %v763_v29  ;;  %v840_v61 = vmul.f32 %v2581_v54, %v2540_v45  ;;  %v2595_v1 = vadd.f32 1e-05, %v516_v7  ;;  %vm845_vm1 = vweird.f32 %v2540_v45 }
 0x149   : > { %v498_v41 = vpop.xlane.xlu2 %497  ;;  %v2597_v46 = vpop.eup %1791  ;;  %v758_v53 = vsel %vm757_vm15, %v2542_v30, %v754_v37  ;;  %v602_v48 = vmul.f32 0.5, %v601_v31  ;;  %1795 = vrsqrt.f32 %v2579_v11  ;;  %vm606_vm3 = vweird.f32 %v2570_v50 }
 0x14a   : > { %v907_v22 = vmul.f32 %v758_v53, %v2288_v4  ;;  %v768_v23 = vsel %vm767_vm0, %v2551_v59, %v764_v49  ;;  %v841_v2 = vmul.f32 %v2581_v54, %v840_v61  ;;  %v590_v26 = vmul.f32 %v2597_v46, %v2557_v51  ;;  %vm2632_vm5 = vmor %vm605_vm14, %vm606_vm3 }
 0x14b   : > { %v1541_v30 = vld [vmem:[#allocation2 + $0x30] sm:$0xff]  ;;  %v908_v56 = vmul.f32 %v768_v23, %v2294_v33  ;;  %v603_v8 = vsub.f32 1.5, %v602_v48  ;;  %vm595_vm4 = vweird.f32 %v2557_v51  ;;  %v838_v59 = vsel %vm2615_vm2, %v2533_v14, %v834_v42 }
 0x14c   : > { %v1545_v4 = vld [vmem:[#allocation2 + $0x50] sm:$0xff]  ;;  %v842_v60 = vmul.f32 0.5, %v841_v2  ;;  %v591_v62 = vmul.f32 %v2597_v46, %v590_v26  ;;  %1797 = vrsqrt.f32 %v2595_v1  ;;  %1189 = vmatmul.bf16.vlgmr.msra.gmra.mxu0 %v1541_v30  ;;  %v534_v25 = vmul.f32 0.0078125, %v500_v47 }
 0x14d   : > { %v2627_v19 = vpop.eup %1793  ;;  %v1614_v6 = vpack.c.bf16 %v908_v56, %v907_v22  ;;  %v604_v33 = vmul.f32 %v2570_v50, %v603_v8  ;;  %v526_v34 = vmul.f32 0.0078125, %v484_v39  ;;  %1209 = vmatmul.bf16.vlgmr.msra.gmra.mxu1 %v1545_v4  ;;  %vm846_vm6 = vweird.f32 %v2581_v54 }
 0x14e   : > { %v843_v14 = vsub.f32 1.5, %v842_v60  ;;  %v592_v7 = vmul.f32 0.5, %v591_v62  ;;  %v770_v17 = vmul.f32 %v2627_v19, %v2575_v38  ;;  %vm596_vm7 = vweird.f32 %v2597_v46  ;;  %vm847_vm8 = vmor %vm845_vm1, %vm846_vm6 }
 0x14f   : > { %v2639_v63 = vpop.eup %1795  ;;  %1654 = vst [vmem:[#allocation2 + $0x20] sm:$0xff] %v1614_v6   ;;  %v608_v39 = vsel %vm2632_vm5, %v2570_v50, %v604_v33  ;;  %v2645_v58 = vadd.f32 1e-05, %v534_v25  ;;  %v2647_v29 = vadd.f32 1e-05, %v526_v34  ;;  %v533_v49 = vmul.f32 0.0078125, %v498_v41  ;;  %vm597_vm10 = vmor %vm595_vm4, %vm596_vm7 }
 0x150   : > { %v450_v37 = vpop.xlane.xlu1 %449  ;;  %v844_v31 = vmul.f32 %v2581_v54, %v843_v14  ;;  %v593_v47 = vsub.f32 1.5, %v592_v7  ;;  %v771_v42 = vmul.f32 %v2627_v19, %v770_v17  ;;  %v915_v61 = vmul.f32 %v838_v59, %v2291_v32  ;;  %v466_v53 = vpop.xlane.xlu0 %465 }
 0x151   : > { %vm775_vm9 = vweird.f32 %v2575_v38  ;;  %v670_v50 = vmul.f32 %v2639_v63, %v2579_v11  ;;  %1799 = vrsqrt.f32 %v2645_v58  ;;  %v452_v48 = vpop.xlane.xlu2 %451  ;;  %v892_v45 = vmul.f32 %v608_v39, %v2306_v43 }
 0x152   : > { %v2660_v22 = vpop.eup %1797  ;;  %v848_v41 = vsel %vm847_vm8, %v2581_v54, %v844_v31  ;;  %v594_v32 = vmul.f32 %v2597_v46, %v593_v47  ;;  %v772_v23 = vmul.f32 0.5, %v771_v42  ;;  %1801 = vrsqrt.f32 %v2647_v29 }
 0x153   : > { %v916_v2 = vmul.f32 %v848_v41, %v2303_v9  ;;  %v671_v26 = vmul.f32 %v2639_v63, %v670_v50  ;;  %v680_v30 = vmul.f32 %v2660_v22, %v2595_v1  ;;  %vm776_vm11 = vweird.f32 %v2627_v19 }
 0x154   : > { %v598_v54 = vsel %vm597_vm10, %v2597_v46, %v594_v32  ;;  %v773_v20 = vsub.f32 1.5, %v772_v23  ;;  %v2676_v56 = vadd.f32 1e-05, %v533_v49  ;;  %vm676_vm12 = vweird.f32 %v2639_v63  ;;  %vm2699_vm15 = vmor %vm775_vm9, %vm776_vm11 }
 0x155   : > { %v1634_v43 = vpack.c.bf16 %v916_v2, %v915_v61  ;;  %v891_v9 = vmul.f32 %v598_v54, %v2309_v44  ;;  %v672_v8 = vmul.f32 0.5, %v671_v26  ;;  %v681_v4 = vmul.f32 %v2660_v22, %v680_v30 }
 0x156   : > { %v2681_v51 = vmul.f32 %v2627_v19, %v773_v20  ;;  %1803 = vrsqrt.f32 %v2676_v56  ;;  %v517_v59 = vmul.f32 0.0078125, %v466_v53  ;;  %v1550_v46 = vld [vmem:[#allocation2 + $0x20] sm:$0xff]  ;;  %v509_v25 = vmul.f32 0.0078125, %v450_v37 }
 0x157   : > { %v2685_v60 = vpop.eup %1799  ;;  %1658 = vst [vmem:[#allocation2 + $0x70] sm:$0xff] %v1634_v43   ;;  %v1574_v62 = vpack.c.bf16 %v892_v45, %v891_v9  ;;  %v673_v6 = vsub.f32 1.5, %v672_v8  ;;  %v682_v33 = vmul.f32 0.5, %v681_v4  ;;  %vm675_vm13 = vweird.f32 %v2579_v11  ;;  %1234 = vmatmul.bf16.gmra.mxu2 %v1550_v46 }
 0x158   : > { %v2687_v44 = vpop.eup %1801  ;;  %vm685_vm14 = vweird.f32 %v2595_v1  ;;  %v860_v34 = vmul.f32 %v2685_v60, %v2645_v58  ;;  %v2693_v28 = vadd.f32 1e-05, %v517_v59  ;;  %vm686_vm0 = vweird.f32 %v2660_v22  ;;  %v468_v39 = vpop.xlane.xlu1 %467  ;;  %vm677_vm1 = vmor %vm675_vm13, %vm676_vm12 }
 0x159   : > { %1646 = vst [vmem:[#allocation2] sm:$0xff] %v1574_v62   ;;  %v674_v7 = vmul.f32 %v2639_v63, %v673_v6  ;;  %v683_v11 = vsub.f32 1.5, %v682_v33  ;;  %v780_v17 = vmul.f32 %v2687_v44, %v2647_v29  ;;  %v778_v37 = vsel %vm2699_vm15, %v2627_v19, %v2681_v51  ;;  %v488_v61 = vpop.xlane.xlu0 %487  ;;  %v486_v50 = vpop.xlane.xlu2 %485  ;;  %vm687_vm3 = vmor %vm685_vm14, %vm686_vm0 }
 0x15a   : > { %v861_v38 = vmul.f32 %v2685_v60, %v860_v34  ;;  %vm865_vm2 = vweird.f32 %v2645_v58  ;;  %1805 = vrsqrt.f32 %v2693_v28  ;;  %v2719_v49 = vadd.f32 1e-05, %v509_v25 }
 0x15b   : > { %v678_v31 = vsel %vm677_vm1, %v2639_v63, %v674_v7  ;;  %v684_v47 = vmul.f32 %v2660_v22, %v683_v11  ;;  %v781_v42 = vmul.f32 %v2687_v44, %v780_v17  ;;  %v510_v32 = vmul.f32 0.0078125, %v452_v48 }
 0x15c   : > { %v2721_v19 = vpop.eup %1803  ;;  %v899_v53 = vmul.f32 %v678_v31, %v2318_v12  ;;  %v862_v41 = vmul.f32 0.5, %v861_v38  ;;  %v518_v63 = vmul.f32 0.0078125, %v468_v39  ;;  %vm866_vm4 = vweird.f32 %v2685_v60 }
 0x15d   : > { %v688_v23 = vsel %vm687_vm3, %v2660_v22, %v684_v47  ;;  %v782_v45 = vmul.f32 0.5, %v781_v42  ;;  %v850_v2 = vmul.f32 %v2721_v19, %v2676_v56  ;;  %vm786_vm5 = vweird.f32 %v2687_v44  ;;  %vm2747_vm6 = vmor %vm865_vm2, %vm866_vm4 }
 0x15e   : > { %v900_v26 = vmul.f32 %v688_v23, %v2324_v57  ;;  %v863_v30 = vsub.f32 1.5, %v862_v41  ;;  %1807 = vrsqrt.f32 %v2719_v49  ;;  %v1554_v12 = vld [vmem:[#allocation2 + $0x70] sm:$0xff]  ;;  %v2736_v54 = vadd.f32 1e-05, %v510_v32 }
 0x15f   : > { %v783_v1 = vsub.f32 1.5, %v782_v45  ;;  %v851_v48 = vmul.f32 %v2721_v19, %v850_v2  ;;  %v2738_v22 = vadd.f32 1e-05, %v518_v63  ;;  %v528_v8 = vmul.f32 0.0078125, %v488_v61  ;;  %1254 = vmatmul.bf16.gmra.mxu3 %v1554_v12 }
 0x160   : > { %v2740_v20 = vpop.eup %1805  ;;  %v1594_v43 = vpack.c.bf16 %v900_v26, %v899_v53  ;;  %v864_v9 = vmul.f32 %v2685_v60, %v863_v30  ;;  %v527_v57 = vmul.f32 0.0078125, %v486_v50  ;;  %v1542_v4 = vld [vmem:[#allocation2] sm:$0xff]  ;;  %vm785_vm7 = vweird.f32 %v2647_v29  ;;  %v502_v11 = vpop.xlane.xlu1 %501 }
 0x161   : > { %v784_v59 = vmul.f32 %v2687_v44, %v783_v1  ;;  %v852_v46 = vmul.f32 0.5, %v851_v48  ;;  %v690_v62 = vmul.f32 %v2740_v20, %v2693_v28  ;;  %v909_v6 = vmul.f32 %v778_v37, %v2321_v55  ;;  %vm787_vm8 = vmor %vm785_vm7, %vm786_vm5  ;;  %1194 = vmatmul.bf16.gmra.mxu0 %v1542_v4  ;;  %v504_v37 = vpop.xlane.xlu2 %503 }
 0x162   : > { %1650 = vst [vmem:[#allocation2 + $0x68] sm:$0xff] %v1594_v43   ;;  %vm855_vm9 = vweird.f32 %v2676_v56  ;;  %vm856_vm10 = vweird.f32 %v2721_v19  ;;  %1809 = vrsqrt.f32 %v2736_v54  ;;  %v868_v58 = vsel %vm2747_vm6, %v2685_v60, %v864_v9 }
 0x163   : > { %v788_v29 = vsel %vm787_vm8, %v2687_v44, %v784_v59  ;;  %v853_v33 = vsub.f32 1.5, %v852_v46  ;;  %v691_v55 = vmul.f32 %v2740_v20, %v690_v62  ;;  %1811 = vrsqrt.f32 %v2738_v22  ;;  %v454_v44 = vpop.xlane.xlu0 %453  ;;  %vm857_vm12 = vmor %vm855_vm9, %vm856_vm10 }
 0x164   : > { %v2766_v25 = vpop.eup %1807  ;;  %v910_v34 = vmul.f32 %v788_v29, %v2333_v15  ;;  %v2770_v14 = vadd.f32 1e-05, %v528_v8  ;;  %v2772_v7 = vadd.f32 1e-05, %v527_v57  ;;  %vm695_vm11 = vweird.f32 %v2693_v28 }
 0x165   : > { %v854_v17 = vmul.f32 %v2721_v19, %v853_v33  ;;  %v692_v39 = vmul.f32 0.5, %v691_v55  ;;  %v610_v60 = vmul.f32 %v2766_v25, %v2719_v49  ;;  %v918_v38 = vmul.f32 %v868_v58, %v2336_v3 }
 0x166   : > { %v1619_v15 = vpack.c.bf16 %v910_v34, %v909_v6  ;;  %vm696_vm13 = vweird.f32 %v2740_v20  ;;  %1813 = vrsqrt.f32 %v2770_v14  ;;  %v535_v50 = vmul.f32 0.0078125, %v502_v11 }
 0x167   : > { %v858_v31 = vsel %vm857_vm12, %v2721_v19, %v854_v17  ;;  %v693_v47 = vsub.f32 1.5, %v692_v39  ;;  %v611_v42 = vmul.f32 %v2766_v25, %v610_v60  ;;  %1815 = vrsqrt.f32 %v2772_v7  ;;  %vm2806_vm0 = vmor %vm695_vm11, %vm696_vm13 }
 0x168   : > { %v2788_v61 = vpop.eup %1809  ;;  %1655 = vst [vmem:[#allocation2 + $0x10] sm:$0xff] %v1619_v15   ;;  %v917_v3 = vmul.f32 %v858_v31, %v2339_v5  ;;  %v511_v53 = vmul.f32 0.0078125, %v454_v44  ;;  %v536_v56 = vmul.f32 0.0078125, %v504_v37  ;;  %vm615_vm14 = vweird.f32 %v2719_v49  ;;  %v456_v58 = vpop.xlane.xlu1 %455 }
 0x169   : > { %v694_v41 = vmul.f32 %v2740_v20, %v693_v47  ;;  %v612_v32 = vmul.f32 0.5, %v611_v42  ;;  %v620_v19 = vmul.f32 %v2788_v61, %v2736_v54  ;;  %v1546_v63 = vld [vmem:[#allocation2 + $0x68] sm:$0xff]  ;;  %v2795_v23 = vpop.eup %1811  ;;  %vm625_vm15 = vweird.f32 %v2736_v54  ;;  %v470_v39 = vpop.xlane.xlu2 %469 }
 0x16a   : > { %v1639_v45 = vpack.c.bf16 %v918_v38, %v917_v3  ;;  %v2798_v2 = vadd.f32 1e-05, %v535_v50  ;;  %v2800_v5 = vadd.f32 1e-05, %v511_v53  ;;  %vm616_vm1 = vweird.f32 %v2766_v25  ;;  %1214 = vmatmul.bf16.gmra.mxu1 %v1546_v63 }
 0x16b   : > { %v613_v30 = vsub.f32 1.5, %v612_v32  ;;  %v621_v12 = vmul.f32 %v2788_v61, %v620_v19  ;;  %v700_v1 = vmul.f32 %v2795_v23, %v2738_v22  ;;  %v698_v28 = vsel %vm2806_vm0, %v2740_v20, %v694_v41  ;;  %vm2834_vm4 = vmor %vm615_vm14, %vm616_vm1 }
 0x16c   : > { %v2814_v48 = vpop.eup %1813  ;;  %1659 = vst [vmem:[#allocation2 + $0x78] sm:$0xff] %v1639_v45   ;;  %vm705_vm2 = vweird.f32 %v2738_v22  ;;  %1817 = vrsqrt.f32 %v2798_v2  ;;  %v2821_v43 = vadd.f32 1e-05, %v536_v56  ;;  %vm805_vm3 = vweird.f32 %v2770_v14 }
 0x16d   : > { %v2823_v9 = vpop.eup %1815  ;;  %v614_v8 = vmul.f32 %v2766_v25, %v613_v30  ;;  %v622_v57 = vmul.f32 0.5, %v621_v12  ;;  %v701_v4 = vmul.f32 %v2795_v23, %v700_v1  ;;  %v800_v51 = vmul.f32 %v2814_v48, %v2770_v14 }
 0x16e   : > { %vm626_vm5 = vweird.f32 %v2788_v61  ;;  %v790_v59 = vmul.f32 %v2823_v9, %v2772_v7  ;;  %vm795_vm6 = vweird.f32 %v2772_v7  ;;  %1819 = vrsqrt.f32 %v2800_v5 }
 0x16f   : > { %v618_v46 = vsel %vm2834_vm4, %v2766_v25, %v614_v8  ;;  %v623_v62 = vsub.f32 1.5, %v622_v57  ;;  %v702_v6 = vmul.f32 0.5, %v701_v4  ;;  %v801_v49 = vmul.f32 %v2814_v48, %v800_v51  ;;  %v1551_v29 = vld [vmem:[#allocation2 + $0x10] sm:$0xff]  ;;  %v472_v25 = vpop.xlane.xlu0 %471  ;;  %vm627_vm9 = vmor %vm625_vm15, %vm626_vm5 }
 0x170   : > { %v901_v33 = vmul.f32 %v698_v28, %v2351_v40  ;;  %vm706_vm7 = vweird.f32 %v2795_v23  ;;  %v791_v55 = vmul.f32 %v2823_v9, %v790_v59  ;;  %1821 = vrsqrt.f32 %v2821_v43  ;;  %1239 = vmatmul.bf16.gmra.mxu2 %v1551_v29 }
 0x171   : > { %v624_v34 = vmul.f32 %v2788_v61, %v623_v62  ;;  %v703_v11 = vsub.f32 1.5, %v702_v6  ;;  %v802_v17 = vmul.f32 0.5, %v801_v49  ;;  %vm806_vm8 = vweird.f32 %v2814_v48  ;;  %vm707_vm11 = vmor %vm705_vm2, %vm706_vm7 }
 0x172   : > { %v1818_v60 = vpop.eup %1817  ;;  %v893_v44 = vmul.f32 %v618_v46, %v2348_v18  ;;  %v792_v40 = vmul.f32 0.5, %v791_v55  ;;  %vm796_vm10 = vweird.f32 %v2823_v9  ;;  %v512_v37 = vmul.f32 0.0078125, %v456_v58  ;;  %vm807_vm12 = vmor %vm805_vm3, %vm806_vm8 }
 0x173   : > { %v628_v38 = vsel %vm627_vm9, %v2788_v61, %v624_v34  ;;  %v704_v15 = vmul.f32 %v2795_v23, %v703_v11  ;;  %v803_v31 = vsub.f32 1.5, %v802_v17  ;;  %v870_v47 = vmul.f32 %v1818_v60, %v2798_v2  ;;  %v1555_v42 = vld [vmem:[#allocation2 + $0x78] sm:$0xff]  ;;  %vm797_vm13 = vmor %vm795_vm6, %vm796_vm10 }
 0x174   : > { %v2862_v3 = vpop.eup %1819  ;;  %v894_v18 = vmul.f32 %v628_v38, %v2354_v10  ;;  %v793_v54 = vsub.f32 1.5, %v792_v40  ;;  %v520_v50 = vmul.f32 0.0078125, %v472_v25  ;;  %v519_v53 = vmul.f32 0.0078125, %v470_v39  ;;  %1259 = vmatmul.bf16.gmra.mxu3 %v1555_v42 }
 0x175   : > { %v708_v61 = vsel %vm707_vm11, %v2795_v23, %v704_v15  ;;  %v804_v56 = vmul.f32 %v2814_v48, %v803_v31  ;;  %v871_v41 = vmul.f32 %v1818_v60, %v870_v47  ;;  %v630_v32 = vmul.f32 %v2862_v3, %v2800_v5 }
 0x176   : > { %v1822_v19 = vpop.eup %1821  ;;  %v1579_v63 = vpack.c.bf16 %v894_v18, %v893_v44  ;;  %v902_v10 = vmul.f32 %v708_v61, %v2363_v21  ;;  %v794_v22 = vmul.f32 %v2823_v9, %v793_v54  ;;  %v2879_v45 = vadd.f32 1e-05, %v512_v37 }
 0x177   : > { %v808_v23 = vsel %vm807_vm12, %v2814_v48, %v804_v56  ;;  %v872_v26 = vmul.f32 0.5, %v871_v41  ;;  %v880_v30 = vmul.f32 %v1822_v19, %v2821_v43  ;;  %vm876_vm14 = vweird.f32 %v1818_v60 }
 0x178   : > { %1647 = vst [vmem:[#allocation2 + $0x58] sm:$0xff] %v1579_v63   ;;  %v1599_v21 = vpack.c.bf16 %v902_v10, %v901_v33  ;;  %v912_v12 = vmul.f32 %v808_v23, %v2369_v13  ;;  %v798_v14 = vsel %vm797_vm13, %v2823_v9, %v794_v22  ;;  %v631_v48 = vmul.f32 %v2862_v3, %v630_v32  ;;  %v2914_v10 = vld [vmem:[%s3025_s2] ss:$0 sm:$0xff] }
 0x179   : > { %v911_v1 = vmul.f32 %v798_v14, %v2366_v52  ;;  %v873_v28 = vsub.f32 1.5, %v872_v26  ;;  %v881_v8 = vmul.f32 %v1822_v19, %v880_v30  ;;  %1823 = vrsqrt.f32 %v2879_v45 }
 0x17a   : > { %1651 = vst [vmem:[#allocation2 + $0x8] sm:$0xff] %v1599_v21   ;;  %v552_v7 = vadd.f32 1e-05, %v520_v50  ;;  %v2892_v57 = vadd.f32 1e-05, %v519_v53  ;;  %vm875_vm15 = vweird.f32 %v2798_v2  ;;  %vm886_vm1 = vweird.f32 %v1822_v19 }
 0x17b   : > { %v1624_v4 = vpack.c.bf16 %v912_v12, %v911_v1  ;;  %v874_v51 = vmul.f32 %v1818_v60, %v873_v28  ;;  %v882_v13 = vmul.f32 0.5, %v881_v8  ;;  %vm877_vm0 = vmor %vm875_vm15, %vm876_vm14  ;;  %v632_v9 = vmul.f32 0.5, %v631_v48 }
 0x17c   : > { %1825 = vrsqrt.f32 %v552_v7  ;;  %vm885_vm2 = vweird.f32 %v2821_v43  ;;  %vm636_vm4 = vweird.f32 %v2862_v3  ;;  %vm635_vm5 = vweird.f32 %v2800_v5 }
 0x17d   : > { %1656 = vst [vmem:[#allocation2 + $0x38] sm:$0xff] %v1624_v4   ;;  %v878_v52 = vsel %vm877_vm0, %v1818_v60, %v874_v51  ;;  %v883_v20 = vsub.f32 1.5, %v882_v13  ;;  %1827 = vrsqrt.f32 %v2892_v57  ;;  %vm887_vm3 = vmor %vm885_vm2, %vm886_vm1  ;;  %v633_v49 = vsub.f32 1.5, %v632_v9 }
 0x17e   : > { %v919_v6 = vmul.f32 %v878_v52, %v2378_v24  ;;  %vm637_vm7 = vmor %vm635_vm5, %vm636_vm4  ;;  %vm645_vm8 = vweird.f32 %v2879_v45  ;;  %vm725_vm12 = vweird.f32 %v552_v7  ;;  %vm715_vm14 = vweird.f32 %v2892_v57 }
 0x17f   : > { %v884_v59 = vmul.f32 %v1822_v19, %v883_v20  ;;  %v1543_v46 = vld [vmem:[#allocation2 + $0x58] sm:$0xff]  ;;  %v1824_v62 = vpop.eup %1823  ;;  %v634_v24 = vmul.f32 %v2862_v3, %v633_v49 }
 0x180   : > { %v640_v58 = vmul.f32 %v1824_v62, %v2879_v45  ;;  %1199 = vmatmul.bf16.gmra.mxu0 %v1543_v46  ;;  %vm646_vm6 = vweird.f32 %v1824_v62 }
 0x181   : > { %v888_v2 = vsel %vm887_vm3, %v1822_v19, %v884_v59  ;;  %v1547_v29 = vld [vmem:[#allocation2 + $0x8] sm:$0xff]  ;;  %v638_v15 = vsel %vm637_vm7, %v2862_v3, %v634_v24  ;;  %vm647_vm10 = vmor %vm645_vm8, %vm646_vm6 }
 0x182   : > { %v1826_v33 = vpop.eup %1825  ;;  %v920_v55 = vmul.f32 %v888_v2, %v2381_v0  ;;  %v641_v11 = vmul.f32 %v1824_v62, %v640_v58  ;;  %1219 = vmatmul.bf16.gmra.mxu1 %v1547_v29  ;;  %v895_v5 = vmul.f32 %v638_v15, %v2384_v16 }
 0x183   : > { %v1828_v34 = vpop.eup %1827  ;;  %v720_v17 = vmul.f32 %v1826_v33, %v552_v7  ;;  %vm726_vm9 = vweird.f32 %v1826_v33 }
 0x184   : > { %v1644_v25 = vpack.c.bf16 %v920_v55, %v919_v6  ;;  %v710_v43 = vmul.f32 %v1828_v34, %v2892_v57  ;;  %v1552_v39 = vld [vmem:[#allocation2 + $0x38] sm:$0xff]  ;;  %v642_v60 = vmul.f32 0.5, %v641_v11  ;;  %vm716_vm11 = vweird.f32 %v1828_v34  ;;  %vm727_vm13 = vmor %vm725_vm12, %vm726_vm9 }
 0x185   : > { %v721_v44 = vmul.f32 %v1826_v33, %v720_v17  ;;  %1244 = vmatmul.bf16.gmra.mxu2 %v1552_v39  ;;  %vm717_vm15 = vmor %vm715_vm14, %vm716_vm11 }
 0x186   : > { %1660 = vst [vmem:[#allocation2 + $0x28] sm:$0xff] %v1644_v25   ;;  %v711_v40 = vmul.f32 %v1828_v34, %v710_v43  ;;  %v643_v0 = vsub.f32 1.5, %v642_v60 }
 0x187   : > { %v722_v37 = vmul.f32 0.5, %v721_v44 }
 0x188   : > { %v712_v38 = vmul.f32 0.5, %v711_v40  ;;  %v644_v31 = vmul.f32 %v1824_v62, %v643_v0 }
 0x189   : > { %v723_v47 = vsub.f32 1.5, %v722_v37 }
 0x18a   : > { %v713_v42 = vsub.f32 1.5, %v712_v38  ;;  %v648_v18 = vsel %vm647_vm10, %v1824_v62, %v644_v31 }
 0x18b   : > { %v724_v54 = vmul.f32 %v1826_v33, %v723_v47  ;;  %v896_v50 = vmul.f32 %v648_v18, %v2396_v35 }
 0x18c   : > { %v714_v53 = vmul.f32 %v1828_v34, %v713_v42 }
 0x18d   : > { %v728_v61 = vsel %vm727_vm13, %v1826_v33, %v724_v54  ;;  %v1556_v3 = vld [vmem:[#allocation2 + $0x28] sm:$0xff]  ;;  %v1584_v56 = vpack.c.bf16 %v896_v50, %v895_v5 }
 0x18e   : > { %v904_v41 = vmul.f32 %v728_v61, %v2399_v36  ;;  %v718_v32 = vsel %vm717_vm15, %v1828_v34, %v714_v53  ;;  %1264 = vmatmul.bf16.gmra.mxu3 %v1556_v3 }
 0x18f   : > { %v903_v19 = vmul.f32 %v718_v32, %v2393_v27  ;;  %1648 = vst [vmem:[#allocation2 + $0x18] sm:$0xff] %v1584_v56  }
 0x191   : > { %v1604_v63 = vpack.c.bf16 %v904_v41, %v903_v19 }
 0x193   : > { %1652 = vst [vmem:[#allocation2 + $0x48] sm:$0xff] %v1604_v63  }
 0x196   : > { %v1544_v16 = vld [vmem:[#allocation2 + $0x18] sm:$0xff] }
 0x197   : > { %1204 = vmatmul.bf16.gmra.mxu0 %v1544_v16 }
 0x19a   : > { %v1548_v35 = vld [vmem:[#allocation2 + $0x48] sm:$0xff] }
 0x19b   : > { %1224 = vmatmul.bf16.gmra.mxu1 %v1548_v35 }
 0x1c6   : > { %v1230_v22 = vpop.f32.mrf.mxu2 }
 0x1c7   : > { %v1231_v36 = vadd.f32 %v2914_v10, %v1230_v22  ;;  %v1250_v45 = vpop.f32.mrf.mxu3 }
 0x1c8   : > { %v1251_v23 = vadd.f32 %v2914_v10, %v1250_v45 }
 0x1c9   : > { %1286 = vst [vmem:[%s2920_s22 + $0x80] sm:$0xff] %v1231_v36  ;;  %v1190_v27 = vpop.f32.mrf.mxu0 }
 0x1ca   : > { %1294 = vst [vmem:[%s2920_s22 + $0xc0] sm:$0xff] %v1251_v23  ;;  %v1191_v26 = vadd.f32 %v2914_v10, %v1190_v27  ;;  %v1210_v30 = vpop.f32.mrf.mxu1 }
 0x1cb   : > { %v1211_v21 = vadd.f32 %v2914_v10, %v1210_v30 }
 0x1cc   : > { %1270 = vst [vmem:[%s2920_s22] sm:$0xff] %v1191_v26 }
 0x1cd   : > { %1278 = vst [vmem:[%s2920_s22 + $0x40] sm:$0xff] %v1211_v21 }
 0x1ce   : > { %v1232_v12 = vpop.f32.mrf.mxu2 }
 0x1cf   : > { %v1233_v14 = vadd.f32 %v2914_v10, %v1232_v12  ;;  %v1252_v1 = vpop.f32.mrf.mxu3 }
 0x1d0   : > { %v1253_v28 = vadd.f32 %v2914_v10, %v1252_v1 }
 0x1d1   : > { %1287 = vst [vmem:[%s2920_s22 + $0x88] sm:$0xff] %v1233_v14  ;;  %v1192_v48 = vpop.f32.mrf.mxu0 }
 0x1d2   : > { %1295 = vst [vmem:[%s2920_s22 + $0xc8] sm:$0xff] %v1253_v28  ;;  %v1193_v8 = vadd.f32 %v2914_v10, %v1192_v48  ;;  %v1212_v7 = vpop.f32.mrf.mxu1 }
 0x1d3   : > { %v1213_v57 = vadd.f32 %v2914_v10, %v1212_v7 }
 0x1d4   : > { %1271 = vst [vmem:[%s2920_s22 + $0x8] sm:$0xff] %v1193_v8 }
 0x1d5   : > { %1279 = vst [vmem:[%s2920_s22 + $0x48] sm:$0xff] %v1213_v57 }
 0x1da   : > { %v1235_v4 = vpop.f32.mrf.mxu2 }
 0x1db   : > { %v1236_v51 = vadd.f32 %v2914_v10, %v1235_v4 }
 0x1dd   : > { %1288 = vst [vmem:[%s2920_s22 + $0x90] sm:$0xff] %v1236_v51 }
 0x1de   : > { %v1195_v13 = vpop.f32.mrf.mxu0 }
 0x1df   : > { %v1196_v52 = vadd.f32 %v2914_v10, %v1195_v13 }
 0x1e1   : > { %1272 = vst [vmem:[%s2920_s22 + $0x10] sm:$0xff] %v1196_v52 }
 0x1e2   : > { %v1237_v9 = vpop.f32.mrf.mxu2  ;;  %v1255_v20 = vpop.f32.mrf.mxu3 }
 0x1e3   : > { %v1238_v59 = vadd.f32 %v2914_v10, %v1237_v9  ;;  %v1256_v46 = vadd.f32 %v2914_v10, %v1255_v20 }
 0x1e5   : > { %1289 = vst [vmem:[%s2920_s22 + $0x98] sm:$0xff] %v1238_v59 }
 0x1e6   : > { %1296 = vst [vmem:[%s2920_s22 + $0xd0] sm:$0xff] %v1256_v46  ;;  %v1197_v62 = vpop.f32.mrf.mxu0 }
 0x1e7   : > { %v1198_v6 = vadd.f32 %v2914_v10, %v1197_v62  ;;  %v1215_v49 = vpop.f32.mrf.mxu1 }
 0x1e8   : > { %v1216_v2 = vadd.f32 %v2914_v10, %v1215_v49 }
 0x1e9   : > { %1273 = vst [vmem:[%s2920_s22 + $0x18] sm:$0xff] %v1198_v6 }
 0x1ea   : > { %1280 = vst [vmem:[%s2920_s22 + $0x50] sm:$0xff] %v1216_v2  ;;  %v1257_v58 = vpop.f32.mrf.mxu3 }
 0x1eb   : > { %v1258_v29 = vadd.f32 %v2914_v10, %v1257_v58 }
 0x1ed   : > { %1297 = vst [vmem:[%s2920_s22 + $0xd8] sm:$0xff] %v1258_v29 }
 0x1ef   : > { %v1217_v33 = vpop.f32.mrf.mxu1 }
 0x1f0   : > { %v1218_v55 = vadd.f32 %v2914_v10, %v1217_v33 }
 0x1f2   : > { %1281 = vst [vmem:[%s2920_s22 + $0x58] sm:$0xff] %v1218_v55 }
 0x1f3   : > { %v1240_v34 = vpop.f32.mrf.mxu2 }
 0x1f4   : > { %v1241_v11 = vadd.f32 %v2914_v10, %v1240_v34 }
 0x1f6   : > { %1290 = vst [vmem:[%s2920_s22 + $0xa0] sm:$0xff] %v1241_v11 }
 0x1f7   : > { %v1260_v17 = vpop.f32.mrf.mxu3 }
 0x1f8   : > { %v1261_v25 = vadd.f32 %v2914_v10, %v1260_v17 }
 0x1fa   : > { %1298 = vst [vmem:[%s2920_s22 + $0xe0] sm:$0xff] %v1261_v25 }
 0x1fb   : > { %v1242_v43 = vpop.f32.mrf.mxu2 }
 0x1fc   : > { %v1243_v39 = vadd.f32 %v2914_v10, %v1242_v43 }
 0x1fd   : > { %v1200_v24 = vpop.f32.mrf.mxu0 }
 0x1fe   : > { %v1201_v60 = vadd.f32 %v2914_v10, %v1200_v24  ;;  %1291 = vst [vmem:[%s2920_s22 + $0xa8] sm:$0xff] %v1243_v39 }
 0x1ff   : > { %v1262_v44 = vpop.f32.mrf.mxu3  ;;  %v1220_v40 = vpop.f32.mrf.mxu1 }
 0x200   : > { %1274 = vst [vmem:[%s2920_s22 + $0x20] sm:$0xff] %v1201_v60  ;;  %v1263_v0 = vadd.f32 %v2914_v10, %v1262_v44  ;;  %v1221_v37 = vadd.f32 %v2914_v10, %v1220_v40 }
 0x202   : > { %1299 = vst [vmem:[%s2920_s22 + $0xe8] sm:$0xff] %v1263_v0 }
 0x203   : > { %1282 = vst [vmem:[%s2920_s22 + $0x60] sm:$0xff] %v1221_v37 }
 0x205   : > { %v1202_v38 = vpop.f32.mrf.mxu0 }
 0x206   : > { %v1203_v15 = vadd.f32 %v2914_v10, %v1202_v38 }
 0x207   : > { %v1222_v31 = vpop.f32.mrf.mxu1 }
 0x208   : > { %1275 = vst [vmem:[%s2920_s22 + $0x28] sm:$0xff] %v1203_v15  ;;  %v1245_v47 = vpop.f32.mrf.mxu2  ;;  %v1223_v42 = vadd.f32 %v2914_v10, %v1222_v31 }
 0x209   : > { %v1246_v18 = vadd.f32 %v2914_v10, %v1245_v47 }
 0x20a   : > { %1283 = vst [vmem:[%s2920_s22 + $0x68] sm:$0xff] %v1223_v42 }
 0x20b   : > { %1292 = vst [vmem:[%s2920_s22 + $0xb0] sm:$0xff] %v1246_v18 }
 0x210   : > { %v1247_v54 = vpop.f32.mrf.mxu2 }
 0x211   : > { %v1248_v5 = vadd.f32 %v2914_v10, %v1247_v54  ;;  %v1265_v50 = vpop.f32.mrf.mxu3 }
 0x212   : > { %v1266_v53 = vadd.f32 %v2914_v10, %v1265_v50 }
 0x213   : > { %1293 = vst [vmem:[%s2920_s22 + $0xb8] sm:$0xff] %v1248_v5 }
 0x214   : > { %1300 = vst [vmem:[%s2920_s22 + $0xf0] sm:$0xff] %v1266_v53  ;;  %v1205_v61 = vpop.f32.mrf.mxu0 }
 0x215   : > { %v1206_v3 = vadd.f32 %v2914_v10, %v1205_v61 }
 0x217   : > { %1276 = vst [vmem:[%s2920_s22 + $0x30] sm:$0xff] %v1206_v3 }
 0x218   : > { %v1225_v56 = vpop.f32.mrf.mxu1 }
 0x219   : > { %v1226_v41 = vadd.f32 %v2914_v10, %v1225_v56  ;;  %v1267_v32 = vpop.f32.mrf.mxu3 }
 0x21a   : > { %v1268_v19 = vadd.f32 %v2914_v10, %v1267_v32 }
 0x21b   : > { %1284 = vst [vmem:[%s2920_s22 + $0x70] sm:$0xff] %v1226_v41 }
 0x21c   : > { %1301 = vst [vmem:[%s2920_s22 + $0xf8] sm:$0xff] %v1268_v19  ;;  %v1207_v63 = vpop.f32.mrf.mxu0 }
 0x21d   : > { %v1208_v16 = vadd.f32 %v2914_v10, %v1207_v63 }
 0x21f   : > { %1277 = vst [vmem:[%s2920_s22 + $0x38] sm:$0xff] %v1208_v16 }
 0x220   : > { %v1227_v35 = vpop.f32.mrf.mxu1 }
 0x221   : > { %v1228_v22 = vadd.f32 %v2914_v10, %v1227_v35 }
 0x223   : > { %1285 = vst [vmem:[%s2920_s22 + $0x78] sm:$0xff] %v1228_v22 }
 0x224   : > { %1916 = shalt.err (!%p1913_p0)
}
 0x225   : > { %s1982_s6 = smov 128   ;;  %s1983_s19 = smov 8  }
 0x226   : > { %1691 = dma.vmem_to_hbm [thread:$0]  (%p2083_p5), %s1317_s25, 4096, %s1319_s26, %s1303_s15, %s1982_s6, %s1982_s6, %s1983_s19  }
 0x227 PF: > { %s1333_s1 = sand.u32 1, %s1955_s12   ;;  %p1702_p3 = pnand %p1431_p11, %p2053_p6 }
 0x228   : > { %s1334_s20 = scalar_lea.sflag [#allocation5], %s1333_s1 }
 0x229   : > { %p1703_p7 = pneg %p1702_p3 }
 0x22b   : > { %1950 = dma.done.wait (%p1703_p7), %s1334_s20, 4096  }
 0x22c   : > { %1952 = vsyncadd (%p1703_p7), %s1334_s20, 4294963200  ;;  %s20_s17 = sadd.s32 1, %s1975_s17   ;;  %s3056_s12 = smov %s1959_s13 }
 0x22d   : > { %p17_p9 = scmp.ge.s32.totalorder %s20_s17, 4   ;;  %s3057_s13 = smov %s1963_s14 }
 0x22e   : > { %s3058_s14 = smov %s2092_s18  ;;  %s3059_s15 = smov %s1971_s16 }
 0x22f   : > { %s3060_s16 = smov %s3062_s5  ;;  %19 = sbr.rel (!%p17_p9) target bundleno = 9 (0x9), region = 89 }
 0x234   :  { %1340 = vsyncpa [#allocation4], 1 }
 0x235   :  { %1342 = vsyncpa [#allocation4 + $0x1], 1 }
 0x236   :  { %1343 = vsyncpa [#allocation7], 1 }
 0x237   :  { %1344 = vsyncpa [#allocation5], 1 }
 0x238   :  { %1346 = vsyncpa [#allocation5 + $0x1], 1 }

</bundles_post_ra>
